<compile_context>
chip_gen: v5e
topology: v5e:2x2
jax: 0.10.0
libtpu: 0.0.40
codegen_flags: <defaults>
</compile_context>

<pallas_src>
import functools

import jax
import jax.numpy as jnp
from jax.experimental import pallas as pl
from jax.experimental.pallas import tpu as pltpu

# ---------------- small synthetic config (module defaults scaled down) ---------
MAX_DIM = 64 * 16
BATCH = 2
IMG_SIZE = 16
ENC_DIM = 8
ENC_LAYERS = 3
DEC_DIM = 8
DEC_LAYERS = 3
N_ATTRS = 4
SHORTCUT_LAYERS = min(1, DEC_LAYERS - 1)
INJECT_LAYERS = min(0, DEC_LAYERS - 1)
F_SIZE = IMG_SIZE // 2 ** ENC_LAYERS

BN_EPS = 1e-5
LRELU_SLOPE = 0.2

LANE = 128                       # pad Cout to a multiple of the lane width
K_ALIGN = 16                     # bf16 sublane packing: pad K to a multiple of 16
MAX_TILE_M = 64                  # M-tile of the pipelined grid (small for toy shapes)
VMEM_LIMIT = 48 * 1024 * 1024    # below v7x's 64 MiB physical VMEM


def _round_up(x, m):
    return (x + m - 1) // m * m


# ---------------- Pallas kernels ------------------------------------------------
def _mm_stats_kernel(p_ref, w_ref, y_ref, ps_ref):
    """bf16 matmul on the MXU (f32 accumulate) + per-tile BN partial sums.
    p_ref:(1,TM,Kp)  w_ref:(1,Kp,Cp)  y_ref:(1,TM,Cp) f32  ps_ref:(1,8,Cp) f32."""
    y = jnp.dot(p_ref[0], w_ref[0], preferred_element_type=jnp.float32)
    y_ref[...] = y[None]
    s1 = jnp.sum(y, axis=0, keepdims=True)           # per-channel sum
    s2 = jnp.sum(y * y, axis=0, keepdims=True)       # per-channel sum of squares
    row = jax.lax.broadcasted_iota(jnp.int32, (8, y.shape[1]), 0)
    stats = jnp.where(row == 0, s1, jnp.where(row == 1, s2, 0.0))
    ps_ref[...] = stats[None]


def _bn_act_kernel(y_ref, scale_ref, shift_ref, o_ref, *, acti):
    """Folded train-mode BatchNorm (per-channel scale/shift) + activation.
    f32 math, bf16 store."""
    y = y_ref[0] * scale_ref[...] + shift_ref[...]
    if acti == "lrelu":
        y = jnp.where(y >= 0.0, y, LRELU_SLOPE * y)
    elif acti == "relu":
        y = jnp.maximum(y, 0.0)
    o_ref[...] = y.astype(o_ref.dtype)[None]


def _mm_bias_tanh_kernel(p_ref, w_ref, b_ref, o_ref):
    """Last decoder layer: matmul + bias + tanh (no norm)."""
    y = jnp.dot(p_ref[0], w_ref[0], preferred_element_type=jnp.float32)
    o_ref[...] = jnp.tanh(y + b_ref[...])[None]


# ---------------- pallas_call wrappers ------------------------------------------
def _tiling(M, K, Cout):
    Kp = _round_up(K, K_ALIGN)
    Cp = _round_up(Cout, LANE)
    tile_m = min(MAX_TILE_M, _round_up(M, 8))
    Mp = _round_up(M, tile_m)
    return Kp, Cp, tile_m, Mp, Mp // tile_m


def _pad_operands(patches, wmat, Mp, Kp, Cp):
    _, M, K = patches.shape
    Cout = wmat.shape[-1]
    p = jnp.pad(patches.astype(jnp.bfloat16), ((0, 0), (0, Mp - M), (0, Kp - K)))
    w = jnp.pad(wmat.astype(jnp.bfloat16), ((0, 0), (0, Kp - K), (0, Cp - Cout)))
    return p, w


def matmul_with_bn_stats(patches, wmat):
    """patches:(P,M,K), wmat:(P,K,Cout).  Grid over (parity, M-tiles).
    Returns padded pre-norm y (P,Mp,Cp) f32, summed BN stats (8,Cp), meta."""
    P, M, K = patches.shape
    Cout = wmat.shape[-1]
    Kp, Cp, tile_m, Mp, n_tiles = _tiling(M, K, Cout)
    p, w = _pad_operands(patches, wmat, Mp, Kp, Cp)
    cost = pl.CostEstimate(
        flops=2 * P * Mp * Kp * Cp, transcendentals=0,
        bytes_accessed=p.size * 2 + w.size * 2 + P * Mp * Cp * 4 + P * n_tiles * 8 * Cp * 4)
    y, ps = pl.pallas_call(
        _mm_stats_kernel,
        out_shape=(jax.ShapeDtypeStruct((P, Mp, Cp), jnp.float32),
                   jax.ShapeDtypeStruct((P, n_tiles * 8, Cp), jnp.float32)),
        grid=(P, n_tiles),
        in_specs=[pl.BlockSpec((1, tile_m, Kp), lambda par, i: (par, i, 0)),
                  pl.BlockSpec((1, Kp, Cp), lambda par, i: (par, 0, 0))],
        out_specs=(pl.BlockSpec((1, tile_m, Cp), lambda par, i: (par, i, 0)),
                   pl.BlockSpec((1, 8, Cp), lambda par, i: (par, i, 0))),
        compiler_params=pltpu.CompilerParams(
            dimension_semantics=("parallel", "parallel"),
            vmem_limit_bytes=VMEM_LIMIT),
        cost_estimate=cost,
    )(p, w)
    stat_sum = jnp.sum(ps.reshape(P * n_tiles, 8, Cp), axis=0)   # rows 0/1 = sum / sumsq
    meta = dict(M=M, Cout=Cout, Mp=Mp, Cp=Cp, tile_m=tile_m, n_tiles=n_tiles, P=P)
    return y, stat_sum, meta


def apply_bn_act(y_pad, scale, shift, acti, meta):
    P, Mp, Cp = y_pad.shape
    tile_m, n_tiles = meta["tile_m"], meta["n_tiles"]
    return pl.pallas_call(
        functools.partial(_bn_act_kernel, acti=acti),
        out_shape=jax.ShapeDtypeStruct((P, Mp, Cp), jnp.bfloat16),
        grid=(P, n_tiles),
        in_specs=[pl.BlockSpec((1, tile_m, Cp), lambda par, i: (par, i, 0)),
                  pl.BlockSpec((1, Cp), lambda par, i: (0, 0)),
                  pl.BlockSpec((1, Cp), lambda par, i: (0, 0))],
        out_specs=pl.BlockSpec((1, tile_m, Cp), lambda par, i: (par, i, 0)),
        compiler_params=pltpu.CompilerParams(
            dimension_semantics=("parallel", "parallel"),
            vmem_limit_bytes=VMEM_LIMIT),
    )(y_pad, scale.reshape(1, Cp).astype(jnp.float32),
      shift.reshape(1, Cp).astype(jnp.float32))


def matmul_bias_tanh(patches, wmat, bias):
    """Last layer GEMM + bias + tanh. patches:(P,M,K), wmat:(P,K,Cout)."""
    P, M, K = patches.shape
    Cout = wmat.shape[-1]
    Kp, Cp, tile_m, Mp, n_tiles = _tiling(M, K, Cout)
    p, w = _pad_operands(patches, wmat, Mp, Kp, Cp)
    b = jnp.pad(bias.astype(jnp.float32), (0, Cp - Cout)).reshape(1, Cp)
    cost = pl.CostEstimate(
        flops=2 * P * Mp * Kp * Cp, transcendentals=P * Mp * Cp,
        bytes_accessed=p.size * 2 + w.size * 2 + P * Mp * Cp * 4)
    y = pl.pallas_call(
        _mm_bias_tanh_kernel,
        out_shape=jax.ShapeDtypeStruct((P, Mp, Cp), jnp.float32),
        grid=(P, n_tiles),
        in_specs=[pl.BlockSpec((1, tile_m, Kp), lambda par, i: (par, i, 0)),
                  pl.BlockSpec((1, Kp, Cp), lambda par, i: (par, 0, 0)),
                  pl.BlockSpec((1, Cp), lambda par, i: (0, 0))],
        out_specs=pl.BlockSpec((1, tile_m, Cp), lambda par, i: (par, i, 0)),
        compiler_params=pltpu.CompilerParams(
            dimension_semantics=("parallel", "parallel"),
            vmem_limit_bytes=VMEM_LIMIT),
        cost_estimate=cost,
    )(p, w, b)
    return y[:, :M, :Cout]


def _bn_scale_shift(stat_sum, m_total, gamma, beta, Cout, Cp):
    """Fold training-mode BatchNorm (biased variance, eps=1e-5) into scale/shift."""
    mean = stat_sum[0] / m_total
    var = stat_sum[1] / m_total - mean * mean
    gamma_p = jnp.pad(gamma.astype(jnp.float32), (0, Cp - Cout))
    beta_p = jnp.pad(beta.astype(jnp.float32), (0, Cp - Cout))
    scale = gamma_p * jax.lax.rsqrt(var + BN_EPS)
    shift = beta_p - mean * scale
    return scale, shift


# ---------------- JAX glue: layout / patch extraction ---------------------------
def _pad_nhwc(x, p):
    return jnp.pad(x, ((0, 0), (p, p), (p, p), (0, 0)))


def _im2col(xpad, k, stride, OH, OW):
    # returns (N, OH, OW, k*k*C) with last-dim ordering (ky, kx, ci)
    cols = []
    for ky in range(k):
        for kx in range(k):
            cols.append(xpad[:, ky:ky + stride * (OH - 1) + 1:stride,
                                kx:kx + stride * (OW - 1) + 1:stride, :])
    return jnp.concatenate(cols, axis=-1)


def conv2d_bn_lrelu(x, w_oihw, gamma, beta):
    """Conv2d 4x4 s2 p1 (no bias) -> train-mode BatchNorm -> LeakyReLU(0.2)."""
    N, H, W, Cin = x.shape
    Cout, _, KH, KW = w_oihw.shape
    stride, pad = 2, 1
    OH = (H + 2 * pad - KH) // stride + 1
    OW = (W + 2 * pad - KW) // stride + 1
    xpad = _pad_nhwc(x, pad)
    patches = _im2col(xpad, KH, stride, OH, OW).reshape(1, N * OH * OW, KH * KW * Cin)
    wmat = jnp.transpose(w_oihw, (2, 3, 1, 0)).reshape(1, KH * KW * Cin, Cout)
    y_pad, stat_sum, meta = matmul_with_bn_stats(patches, wmat)
    scale, shift = _bn_scale_shift(stat_sum, float(meta["M"]), gamma, beta,
                                   Cout, meta["Cp"])
    y = apply_bn_act(y_pad, scale, shift, "lrelu", meta)
    return y[0, :meta["M"], :Cout].reshape(N, OH, OW, Cout)


def conv_transpose2d_block(x, w_iohw, bias, gamma, beta, *, last):
    """ConvTranspose2d 4x4 s2 p1 via output-parity decomposition, then
    [BatchNorm -> ReLU] or (last layer) [bias -> Tanh]."""
    N, H, W, Cin = x.shape
    _, Cout, KH, KW = w_iohw.shape
    assert (KH, KW) == (4, 4)
    xpad = _pad_nhwc(x, 1)

    # out[2m+p] = in[m - 1 + p_shift]*w[...]: each parity needs only 2 taps per axis.
    def taps(p):                     # (row start in padded input, kernel index)
        return [(p, 3 - p), (p + 1, 1 - p)]

    pat_list, w_list = [], []
    for py in (0, 1):
        for px in (0, 1):
            cols, wrows = [], []
            for ry, ky in taps(py):
                for rx, kx in taps(px):
                    cols.append(xpad[:, ry:ry + H, rx:rx + W, :])
                    wrows.append(w_iohw[:, :, ky, kx])           # (Cin, Cout)
            pat_list.append(jnp.concatenate(cols, axis=-1).reshape(N * H * W, 4 * Cin))
            w_list.append(jnp.concatenate(wrows, axis=0))        # (4*Cin, Cout)
    patches = jnp.stack(pat_list, axis=0)    # (4, M, 4*Cin)
    wmat = jnp.stack(w_list, axis=0)         # (4, 4*Cin, Cout)
    M = N * H * W

    if last:
        y = matmul_bias_tanh(patches, wmat, bias)                 # (4, M, Cout) f32
    else:
        y_pad, stat_sum, meta = matmul_with_bn_stats(patches, wmat)
        # BN statistics over the FULL output (all 4 parities = N*OH*OW rows).
        scale, shift = _bn_scale_shift(stat_sum, float(4 * M), gamma, beta,
                                       Cout, meta["Cp"])
        y = apply_bn_act(y_pad, scale, shift, "relu", meta)[:, :M, :Cout]

    # interleave parities: out[:, 2h+py, 2w+px, :] = y[2*py+px, n*H*W + h*W + w, :]
    y = y.reshape(2, 2, N, H, W, Cout)
    return jnp.transpose(y, (2, 3, 0, 4, 1, 5)).reshape(N, 2 * H, 2 * W, Cout)


# ---------------- parameters (deterministic in-script init) ---------------------
def init_params(key):
    params = {"enc": [], "dec": []}
    k = key
    n_in = 3
    for i in range(ENC_LAYERS):
        n_out = min(ENC_DIM * 2 ** i, MAX_DIM)
        k, kw = jax.random.split(k)
        params["enc"].append({
            "w": jax.random.normal(kw, (n_out, n_in, 4, 4), jnp.float32) * 0.05,
            "gamma": jnp.ones((n_out,), jnp.float32),
            "beta": jnp.zeros((n_out,), jnp.float32),
        })
        n_in = n_out
    n_in = n_in + N_ATTRS
    for i in range(DEC_LAYERS):
        if i < DEC_LAYERS - 1:
            n_out = min(DEC_DIM * 2 ** (DEC_LAYERS - i - 1), MAX_DIM)
            k, kw = jax.random.split(k)
            params["dec"].append({
                "w": jax.random.normal(kw, (n_in, n_out, 4, 4), jnp.float32) * 0.05,
                "gamma": jnp.ones((n_out,), jnp.float32),
                "beta": jnp.zeros((n_out,), jnp.float32),
            })
            n_in = n_out
            n_in = n_in + n_in // 2 if SHORTCUT_LAYERS > i else n_in
            n_in = n_in + N_ATTRS if INJECT_LAYERS > i else n_in
        else:
            k, kw, kb = jax.random.split(k, 3)
            params["dec"].append({
                "w": jax.random.normal(kw, (n_in, 3, 4, 4), jnp.float32) * 0.05,
                "b": jax.random.normal(kb, (3,), jnp.float32) * 0.05,
            })
    return params


# ---------------- Modifier.forward(x, a) ----------------------------------------
def modifier_forward(params, x_nchw, a):
    x = jnp.transpose(x_nchw, (0, 2, 3, 1))   # NCHW -> NHWC (channels on lanes)
    N = x.shape[0]

    # Encoder
    zs = []
    z = x
    for p in params["enc"]:
        z = conv2d_bn_lrelu(z, p["w"], p["gamma"], p["beta"])
        zs.append(z)

    # Decoder: concat attribute tile to the bottleneck
    a_tile = jnp.broadcast_to(a[:, None, None, :], (N, F_SIZE, F_SIZE, a.shape[1]))
    z = jnp.concatenate([zs[-1], a_tile.astype(zs[-1].dtype)], axis=-1)
    for i, p in enumerate(params["dec"]):
        last = (i == DEC_LAYERS - 1)
        if last:
            z = conv_transpose2d_block(z, p["w"], p["b"], None, None, last=True)
        else:
            z = conv_transpose2d_block(z, p["w"], None, p["gamma"], p["beta"], last=False)
        if SHORTCUT_LAYERS > i:
            z = jnp.concatenate([z, zs[DEC_LAYERS - 2 - i].astype(z.dtype)], axis=-1)
        if INJECT_LAYERS > i:
            ft = F_SIZE * 2 ** (i + 1)
            at = jnp.broadcast_to(a[:, None, None, :], (N, ft, ft, a.shape[1]))
            z = jnp.concatenate([z, at.astype(z.dtype)], axis=-1)

    return jnp.transpose(z, (0, 3, 1, 2))      # NHWC -> NCHW, f32


if __name__ == "__main__":
    key = jax.random.PRNGKey(0)
    kx, ka, kp = jax.random.split(key, 3)
    x = jax.random.normal(kx, (BATCH, 3, IMG_SIZE, IMG_SIZE), jnp.float32)
    a = jax.random.normal(ka, (BATCH, N_ATTRS), jnp.float32)
    params = init_params(kp)

    out = jax.jit(modifier_forward)(params, x, a)
    out = jax.block_until_ready(out)
    assert out.shape == (BATCH, 3, IMG_SIZE, IMG_SIZE), out.shape
    assert bool(jnp.all(jnp.isfinite(out)))
    print("KERNEL_OK")
</pallas_src>

<mosaic_0001>
module attributes {stable_mosaic.version = 11 : i64} {
  func.func @_mm_stats_kernel(%arg0: i32, %arg1: i32, %arg2: memref<1x64x48xbf16, #tpu.memory_space<vmem>>, %arg3: memref<1x48x128xbf16, #tpu.memory_space<vmem>>, %arg4: memref<1x64x128xf32, #tpu.memory_space<vmem>>, %arg5: memref<1x8x128xf32, #tpu.memory_space<vmem>>) attributes {dimension_semantics = [#tpu.dimension_semantics<parallel>, #tpu.dimension_semantics<parallel>], iteration_bounds = array<i64: 1, 2>, scalar_prefetch = 0 : i64, scratch_operands = 0 : i64, tpu.core_type = #tpu.core_type<tc>, window_params = [{transform_indices = @transform_0, window_bounds = array<i64: 1, 64, 48>}, {transform_indices = @transform_1, window_bounds = array<i64: 1, 48, 128>}, {transform_indices = @transform_2, window_bounds = array<i64: 1, 64, 128>}, {transform_indices = @transform_3, window_bounds = array<i64: 1, 8, 128>}]} {
    %c0 = arith.constant 0 : index
    %c0_0 = arith.constant 0 : index
    %c0_1 = arith.constant 0 : index
    %0 = vector.load %arg2[%c0, %c0_0, %c0_1] : memref<1x64x48xbf16, #tpu.memory_space<vmem>>, vector<1x64x48xbf16>
    %1 = vector.shape_cast %0 : vector<1x64x48xbf16> to vector<64x48xbf16>
    %c0_2 = arith.constant 0 : index
    %c0_3 = arith.constant 0 : index
    %c0_4 = arith.constant 0 : index
    %2 = vector.load %arg3[%c0_2, %c0_3, %c0_4] : memref<1x48x128xbf16, #tpu.memory_space<vmem>>, vector<1x48x128xbf16>
    %3 = vector.shape_cast %2 : vector<1x48x128xbf16> to vector<48x128xbf16>
    %cst = arith.constant dense<0.000000e+00> : vector<64x128xf32>
    %4 = tpu.matmul %1, %3, %cst {dimension_numbers = #tpu.dot_dimension_numbers<[1], [0], [0], [1], [0, 0, 1, 1], [], []>} : vector<64x48xbf16>, vector<48x128xbf16>, vector<64x128xf32> -> vector<64x128xf32>
    %5 = vector.shape_cast %4 : vector<64x128xf32> to vector<1x64x128xf32>
    %c0_5 = arith.constant 0 : index
    %c0_6 = arith.constant 0 : index
    %c0_7 = arith.constant 0 : index
    %6 = vector.load %arg4[%c0_5, %c0_6, %c0_7] : memref<1x64x128xf32, #tpu.memory_space<vmem>>, vector<1x64x128xf32>
    tpu.vector_store %arg4[%c0_5, %c0_6, %c0_7], %5 {strides = array<i32>} : memref<1x64x128xf32, #tpu.memory_space<vmem>>, vector<1x64x128xf32>,
    %cst_8 = arith.constant dense<0.000000e+00> : vector<128xf32>
    %7 = vector.multi_reduction <add>, %4, %cst_8 [0] : vector<64x128xf32> to vector<128xf32>
    %8 = vector.shape_cast %7 : vector<128xf32> to vector<1x128xf32>
    %9 = arith.mulf %4, %4 : vector<64x128xf32>
    %cst_9 = arith.constant dense<0.000000e+00> : vector<128xf32>
    %10 = vector.multi_reduction <add>, %9, %cst_9 [0] : vector<64x128xf32> to vector<128xf32>
    %11 = vector.shape_cast %10 : vector<128xf32> to vector<1x128xf32>
    %12 = tpu.iota {dimensions = array<i32: 0>} : vector<8x128xi32>
    %c0_i32 = arith.constant 0 : i32
    %13 = vector.broadcast %c0_i32 : i32 to vector<8x128xi32>
    %14 = arith.cmpi eq, %12, %13 : vector<8x128xi32>
    %c1_i32 = arith.constant 1 : i32
    %15 = vector.broadcast %c1_i32 : i32 to vector<8x128xi32>
    %16 = arith.cmpi eq, %12, %15 : vector<8x128xi32>
    %cst_10 = arith.constant 0.000000e+00 : f32
    %17 = vector.shape_cast %11 : vector<1x128xf32> to vector<1x128xf32>
    %18 = vector.broadcast %17 : vector<1x128xf32> to vector<8x128xf32>
    %19 = vector.broadcast %cst_10 : f32 to vector<8x128xf32>
    %20 = arith.select %16, %18, %19 : vector<8x128xi1>, vector<8x128xf32>
    %21 = vector.shape_cast %8 : vector<1x128xf32> to vector<1x128xf32>
    %22 = vector.broadcast %21 : vector<1x128xf32> to vector<8x128xf32>
    %23 = arith.select %14, %22, %20 : vector<8x128xi1>, vector<8x128xf32>
    %24 = vector.shape_cast %23 : vector<8x128xf32> to vector<1x8x128xf32>
    %c0_11 = arith.constant 0 : index
    %c0_12 = arith.constant 0 : index
    %c0_13 = arith.constant 0 : index
    %25 = vector.load %arg5[%c0_11, %c0_12, %c0_13] : memref<1x8x128xf32, #tpu.memory_space<vmem>>, vector<1x8x128xf32>
    tpu.vector_store %arg5[%c0_11, %c0_12, %c0_13], %24 {strides = array<i32>} : memref<1x8x128xf32, #tpu.memory_space<vmem>>, vector<1x8x128xf32>,
    return
  }
  func.func @transform_0(%arg0: i32, %arg1: i32) -> (i32, i32, i32) {
    %c0_i32 = arith.constant 0 : i32
    %c0_i32_0 = arith.constant 0 : i32
    return %arg0, %arg1, %c0_i32 : i32, i32, i32
  }
  func.func @transform_1(%arg0: i32, %arg1: i32) -> (i32, i32, i32) {
    %c0_i32 = arith.constant 0 : i32
    %c0_i32_0 = arith.constant 0 : i32
    %c0_i32_1 = arith.constant 0 : i32
    return %arg0, %c0_i32, %c0_i32_0 : i32, i32, i32
  }
  func.func @transform_2(%arg0: i32, %arg1: i32) -> (i32, i32, i32) {
    %c0_i32 = arith.constant 0 : i32
    %c0_i32_0 = arith.constant 0 : i32
    return %arg0, %arg1, %c0_i32 : i32, i32, i32
  }
  func.func @transform_3(%arg0: i32, %arg1: i32) -> (i32, i32, i32) {
    %c0_i32 = arith.constant 0 : i32
    %c0_i32_0 = arith.constant 0 : i32
    return %arg0, %arg1, %c0_i32 : i32, i32, i32
  }
}

module attributes {stable_mosaic.version = 11 : i64} {
  func.func @_bn_act_kernel(%arg0: i32, %arg1: i32, %arg2: memref<1x64x128xf32, #tpu.memory_space<vmem>>, %arg3: memref<1x128xf32, #tpu.memory_space<vmem>>, %arg4: memref<1x128xf32, #tpu.memory_space<vmem>>, %arg5: memref<1x64x128xbf16, #tpu.memory_space<vmem>>) attributes {dimension_semantics = [#tpu.dimension_semantics<parallel>, #tpu.dimension_semantics<parallel>], iteration_bounds = array<i64: 1, 2>, scalar_prefetch = 0 : i64, scratch_operands = 0 : i64, tpu.core_type = #tpu.core_type<tc>, window_params = [{transform_indices = @transform_0, window_bounds = array<i64: 1, 64, 128>}, {pipeline_mode = #tpu.pipeline_mode<synchronous>, transform_indices = @transform_1, window_bounds = array<i64: 1, 128>}, {pipeline_mode = #tpu.pipeline_mode<synchronous>, transform_indices = @transform_2, window_bounds = array<i64: 1, 128>}, {transform_indices = @transform_3, window_bounds = array<i64: 1, 64, 128>}]} {
    %c0 = arith.constant 0 : index
    %c0_0 = arith.constant 0 : index
    %c0_1 = arith.constant 0 : index
    %0 = vector.load %arg2[%c0, %c0_0, %c0_1] : memref<1x64x128xf32, #tpu.memory_space<vmem>>, vector<1x64x128xf32>
    %1 = vector.shape_cast %0 : vector<1x64x128xf32> to vector<64x128xf32>
    %c0_2 = arith.constant 0 : index
    %c0_3 = arith.constant 0 : index
    %2 = vector.load %arg3[%c0_2, %c0_3] : memref<1x128xf32, #tpu.memory_space<vmem>>, vector<1x128xf32>
    %3 = vector.broadcast %2 : vector<1x128xf32> to vector<64x128xf32>
    %4 = arith.mulf %1, %3 : vector<64x128xf32>
    %c0_4 = arith.constant 0 : index
    %c0_5 = arith.constant 0 : index
    %5 = vector.load %arg4[%c0_4, %c0_5] : memref<1x128xf32, #tpu.memory_space<vmem>>, vector<1x128xf32>
    %6 = vector.broadcast %5 : vector<1x128xf32> to vector<64x128xf32>
    %7 = arith.addf %4, %6 : vector<64x128xf32>
    %cst = arith.constant 0.000000e+00 : f32
    %8 = vector.broadcast %cst : f32 to vector<64x128xf32>
    %9 = arith.cmpf oge, %7, %8 : vector<64x128xf32>
    %cst_6 = arith.constant 2.000000e-01 : f32
    %10 = vector.broadcast %cst_6 : f32 to vector<64x128xf32>
    %11 = arith.mulf %10, %7 : vector<64x128xf32>
    %12 = arith.select %9, %7, %11 : vector<64x128xi1>, vector<64x128xf32>
    %13 = arith.truncf %12 : vector<64x128xf32> to vector<64x128xbf16>
    %14 = vector.shape_cast %13 : vector<64x128xbf16> to vector<1x64x128xbf16>
    %c0_7 = arith.constant 0 : index
    %c0_8 = arith.constant 0 : index
    %c0_9 = arith.constant 0 : index
    %15 = vector.load %arg5[%c0_7, %c0_8, %c0_9] : memref<1x64x128xbf16, #tpu.memory_space<vmem>>, vector<1x64x128xbf16>
    tpu.vector_store %arg5[%c0_7, %c0_8, %c0_9], %14 {strides = array<i32>} : memref<1x64x128xbf16, #tpu.memory_space<vmem>>, vector<1x64x128xbf16>,
    return
  }
  func.func @transform_0(%arg0: i32, %arg1: i32) -> (i32, i32, i32) {
    %c0_i32 = arith.constant 0 : i32
    %c0_i32_0 = arith.constant 0 : i32
    return %arg0, %arg1, %c0_i32 : i32, i32, i32
  }
  func.func @transform_1(%arg0: i32, %arg1: i32) -> (i32, i32) {
    %c0_i32 = arith.constant 0 : i32
    %c0_i32_0 = arith.constant 0 : i32
    %c0_i32_1 = arith.constant 0 : i32
    return %c0_i32, %c0_i32_0 : i32, i32
  }
  func.func @transform_2(%arg0: i32, %arg1: i32) -> (i32, i32) {
    %c0_i32 = arith.constant 0 : i32
    %c0_i32_0 = arith.constant 0 : i32
    %c0_i32_1 = arith.constant 0 : i32
    return %c0_i32, %c0_i32_0 : i32, i32
  }
  func.func @transform_3(%arg0: i32, %arg1: i32) -> (i32, i32, i32) {
    %c0_i32 = arith.constant 0 : i32
    %c0_i32_0 = arith.constant 0 : i32
    return %arg0, %arg1, %c0_i32 : i32, i32, i32
  }
}

module attributes {stable_mosaic.version = 11 : i64} {
  func.func @_bn_act_kernel(%arg0: i32, %arg1: i32, %arg2: memref<1x32x128xf32, #tpu.memory_space<vmem>>, %arg3: memref<1x128xf32, #tpu.memory_space<vmem>>, %arg4: memref<1x128xf32, #tpu.memory_space<vmem>>, %arg5: memref<1x32x128xbf16, #tpu.memory_space<vmem>>) attributes {dimension_semantics = [#tpu.dimension_semantics<parallel>, #tpu.dimension_semantics<parallel>], iteration_bounds = array<i64: 1, 1>, scalar_prefetch = 0 : i64, scratch_operands = 0 : i64, tpu.core_type = #tpu.core_type<tc>, window_params = [{transform_indices = @transform_0, window_bounds = array<i64: 1, 32, 128>}, {pipeline_mode = #tpu.pipeline_mode<synchronous>, transform_indices = @transform_1, window_bounds = array<i64: 1, 128>}, {pipeline_mode = #tpu.pipeline_mode<synchronous>, transform_indices = @transform_2, window_bounds = array<i64: 1, 128>}, {transform_indices = @transform_3, window_bounds = array<i64: 1, 32, 128>}]} {
    %c0 = arith.constant 0 : index
    %c0_0 = arith.constant 0 : index
    %c0_1 = arith.constant 0 : index
    %0 = vector.load %arg2[%c0, %c0_0, %c0_1] : memref<1x32x128xf32, #tpu.memory_space<vmem>>, vector<1x32x128xf32>
    %1 = vector.shape_cast %0 : vector<1x32x128xf32> to vector<32x128xf32>
    %c0_2 = arith.constant 0 : index
    %c0_3 = arith.constant 0 : index
    %2 = vector.load %arg3[%c0_2, %c0_3] : memref<1x128xf32, #tpu.memory_space<vmem>>, vector<1x128xf32>
    %3 = vector.broadcast %2 : vector<1x128xf32> to vector<32x128xf32>
    %4 = arith.mulf %1, %3 : vector<32x128xf32>
    %c0_4 = arith.constant 0 : index
    %c0_5 = arith.constant 0 : index
    %5 = vector.load %arg4[%c0_4, %c0_5] : memref<1x128xf32, #tpu.memory_space<vmem>>, vector<1x128xf32>
    %6 = vector.broadcast %5 : vector<1x128xf32> to vector<32x128xf32>
    %7 = arith.addf %4, %6 : vector<32x128xf32>
    %cst = arith.constant 0.000000e+00 : f32
    %8 = vector.broadcast %cst : f32 to vector<32x128xf32>
    %9 = arith.cmpf oge, %7, %8 : vector<32x128xf32>
    %cst_6 = arith.constant 2.000000e-01 : f32
    %10 = vector.broadcast %cst_6 : f32 to vector<32x128xf32>
    %11 = arith.mulf %10, %7 : vector<32x128xf32>
    %12 = arith.select %9, %7, %11 : vector<32x128xi1>, vector<32x128xf32>
    %13 = arith.truncf %12 : vector<32x128xf32> to vector<32x128xbf16>
    %14 = vector.shape_cast %13 : vector<32x128xbf16> to vector<1x32x128xbf16>
    %c0_7 = arith.constant 0 : index
    %c0_8 = arith.constant 0 : index
    %c0_9 = arith.constant 0 : index
    %15 = vector.load %arg5[%c0_7, %c0_8, %c0_9] : memref<1x32x128xbf16, #tpu.memory_space<vmem>>, vector<1x32x128xbf16>
    tpu.vector_store %arg5[%c0_7, %c0_8, %c0_9], %14 {strides = array<i32>} : memref<1x32x128xbf16, #tpu.memory_space<vmem>>, vector<1x32x128xbf16>,
    return
  }
  func.func @transform_0(%arg0: i32, %arg1: i32) -> (i32, i32, i32) {
    %c0_i32 = arith.constant 0 : i32
    %c0_i32_0 = arith.constant 0 : i32
    return %arg0, %arg1, %c0_i32 : i32, i32, i32
  }
  func.func @transform_1(%arg0: i32, %arg1: i32) -> (i32, i32) {
    %c0_i32 = arith.constant 0 : i32
    %c0_i32_0 = arith.constant 0 : i32
    %c0_i32_1 = arith.constant 0 : i32
    return %c0_i32, %c0_i32_0 : i32, i32
  }
  func.func @transform_2(%arg0: i32, %arg1: i32) -> (i32, i32) {
    %c0_i32 = arith.constant 0 : i32
    %c0_i32_0 = arith.constant 0 : i32
    %c0_i32_1 = arith.constant 0 : i32
    return %c0_i32, %c0_i32_0 : i32, i32
  }
  func.func @transform_3(%arg0: i32, %arg1: i32) -> (i32, i32, i32) {
    %c0_i32 = arith.constant 0 : i32
    %c0_i32_0 = arith.constant 0 : i32
    return %arg0, %arg1, %c0_i32 : i32, i32, i32
  }
}

module attributes {stable_mosaic.version = 11 : i64} {
  func.func @_mm_stats_kernel(%arg0: i32, %arg1: i32, %arg2: memref<1x32x128xbf16, #tpu.memory_space<vmem>>, %arg3: memref<1x128x128xbf16, #tpu.memory_space<vmem>>, %arg4: memref<1x32x128xf32, #tpu.memory_space<vmem>>, %arg5: memref<1x8x128xf32, #tpu.memory_space<vmem>>) attributes {dimension_semantics = [#tpu.dimension_semantics<parallel>, #tpu.dimension_semantics<parallel>], iteration_bounds = array<i64: 1, 1>, scalar_prefetch = 0 : i64, scratch_operands = 0 : i64, tpu.core_type = #tpu.core_type<tc>, window_params = [{transform_indices = @transform_0, window_bounds = array<i64: 1, 32, 128>}, {transform_indices = @transform_1, window_bounds = array<i64: 1, 128, 128>}, {transform_indices = @transform_2, window_bounds = array<i64: 1, 32, 128>}, {transform_indices = @transform_3, window_bounds = array<i64: 1, 8, 128>}]} {
    %c0 = arith.constant 0 : index
    %c0_0 = arith.constant 0 : index
    %c0_1 = arith.constant 0 : index
    %0 = vector.load %arg2[%c0, %c0_0, %c0_1] : memref<1x32x128xbf16, #tpu.memory_space<vmem>>, vector<1x32x128xbf16>
    %1 = vector.shape_cast %0 : vector<1x32x128xbf16> to vector<32x128xbf16>
    %c0_2 = arith.constant 0 : index
    %c0_3 = arith.constant 0 : index
    %c0_4 = arith.constant 0 : index
    %2 = vector.load %arg3[%c0_2, %c0_3, %c0_4] : memref<1x128x128xbf16, #tpu.memory_space<vmem>>, vector<1x128x128xbf16>
    %3 = vector.shape_cast %2 : vector<1x128x128xbf16> to vector<128x128xbf16>
    %cst = arith.constant dense<0.000000e+00> : vector<32x128xf32>
    %4 = tpu.matmul %1, %3, %cst {dimension_numbers = #tpu.dot_dimension_numbers<[1], [0], [0], [1], [0, 0, 1, 1], [], []>} : vector<32x128xbf16>, vector<128x128xbf16>, vector<32x128xf32> -> vector<32x128xf32>
    %5 = vector.shape_cast %4 : vector<32x128xf32> to vector<1x32x128xf32>
    %c0_5 = arith.constant 0 : index
    %c0_6 = arith.constant 0 : index
    %c0_7 = arith.constant 0 : index
    %6 = vector.load %arg4[%c0_5, %c0_6, %c0_7] : memref<1x32x128xf32, #tpu.memory_space<vmem>>, vector<1x32x128xf32>
    tpu.vector_store %arg4[%c0_5, %c0_6, %c0_7], %5 {strides = array<i32>} : memref<1x32x128xf32, #tpu.memory_space<vmem>>, vector<1x32x128xf32>,
    %cst_8 = arith.constant dense<0.000000e+00> : vector<128xf32>
    %7 = vector.multi_reduction <add>, %4, %cst_8 [0] : vector<32x128xf32> to vector<128xf32>
    %8 = vector.shape_cast %7 : vector<128xf32> to vector<1x128xf32>
    %9 = arith.mulf %4, %4 : vector<32x128xf32>
    %cst_9 = arith.constant dense<0.000000e+00> : vector<128xf32>
    %10 = vector.multi_reduction <add>, %9, %cst_9 [0] : vector<32x128xf32> to vector<128xf32>
    %11 = vector.shape_cast %10 : vector<128xf32> to vector<1x128xf32>
    %12 = tpu.iota {dimensions = array<i32: 0>} : vector<8x128xi32>
    %c0_i32 = arith.constant 0 : i32
    %13 = vector.broadcast %c0_i32 : i32 to vector<8x128xi32>
    %14 = arith.cmpi eq, %12, %13 : vector<8x128xi32>
    %c1_i32 = arith.constant 1 : i32
    %15 = vector.broadcast %c1_i32 : i32 to vector<8x128xi32>
    %16 = arith.cmpi eq, %12, %15 : vector<8x128xi32>
    %cst_10 = arith.constant 0.000000e+00 : f32
    %17 = vector.shape_cast %11 : vector<1x128xf32> to vector<1x128xf32>
    %18 = vector.broadcast %17 : vector<1x128xf32> to vector<8x128xf32>
    %19 = vector.broadcast %cst_10 : f32 to vector<8x128xf32>
    %20 = arith.select %16, %18, %19 : vector<8x128xi1>, vector<8x128xf32>
    %21 = vector.shape_cast %8 : vector<1x128xf32> to vector<1x128xf32>
    %22 = vector.broadcast %21 : vector<1x128xf32> to vector<8x128xf32>
    %23 = arith.select %14, %22, %20 : vector<8x128xi1>, vector<8x128xf32>
    %24 = vector.shape_cast %23 : vector<8x128xf32> to vector<1x8x128xf32>
    %c0_11 = arith.constant 0 : index
    %c0_12 = arith.constant 0 : index
    %c0_13 = arith.constant 0 : index
    %25 = vector.load %arg5[%c0_11, %c0_12, %c0_13] : memref<1x8x128xf32, #tpu.memory_space<vmem>>, vector<1x8x128xf32>
    tpu.vector_store %arg5[%c0_11, %c0_12, %c0_13], %24 {strides = array<i32>} : memref<1x8x128xf32, #tpu.memory_space<vmem>>, vector<1x8x128xf32>,
    return
  }
  func.func @transform_0(%arg0: i32, %arg1: i32) -> (i32, i32, i32) {
    %c0_i32 = arith.constant 0 : i32
    %c0_i32_0 = arith.constant 0 : i32
    return %arg0, %arg1, %c0_i32 : i32, i32, i32
  }
  func.func @transform_1(%arg0: i32, %arg1: i32) -> (i32, i32, i32) {
    %c0_i32 = arith.constant 0 : i32
    %c0_i32_0 = arith.constant 0 : i32
    %c0_i32_1 = arith.constant 0 : i32
    return %arg0, %c0_i32, %c0_i32_0 : i32, i32, i32
  }
  func.func @transform_2(%arg0: i32, %arg1: i32) -> (i32, i32, i32) {
    %c0_i32 = arith.constant 0 : i32
    %c0_i32_0 = arith.constant 0 : i32
    return %arg0, %arg1, %c0_i32 : i32, i32, i32
  }
  func.func @transform_3(%arg0: i32, %arg1: i32) -> (i32, i32, i32) {
    %c0_i32 = arith.constant 0 : i32
    %c0_i32_0 = arith.constant 0 : i32
    return %arg0, %arg1, %c0_i32 : i32, i32, i32
  }
}

module attributes {stable_mosaic.version = 11 : i64} {
  func.func @_bn_act_kernel(%arg0: i32, %arg1: i32, %arg2: memref<1x8x128xf32, #tpu.memory_space<vmem>>, %arg3: memref<1x128xf32, #tpu.memory_space<vmem>>, %arg4: memref<1x128xf32, #tpu.memory_space<vmem>>, %arg5: memref<1x8x128xbf16, #tpu.memory_space<vmem>>) attributes {dimension_semantics = [#tpu.dimension_semantics<parallel>, #tpu.dimension_semantics<parallel>], iteration_bounds = array<i64: 1, 1>, scalar_prefetch = 0 : i64, scratch_operands = 0 : i64, tpu.core_type = #tpu.core_type<tc>, window_params = [{transform_indices = @transform_0, window_bounds = array<i64: 1, 8, 128>}, {pipeline_mode = #tpu.pipeline_mode<synchronous>, transform_indices = @transform_1, window_bounds = array<i64: 1, 128>}, {pipeline_mode = #tpu.pipeline_mode<synchronous>, transform_indices = @transform_2, window_bounds = array<i64: 1, 128>}, {transform_indices = @transform_3, window_bounds = array<i64: 1, 8, 128>}]} {
    %c0 = arith.constant 0 : index
    %c0_0 = arith.constant 0 : index
    %c0_1 = arith.constant 0 : index
    %0 = vector.load %arg2[%c0, %c0_0, %c0_1] : memref<1x8x128xf32, #tpu.memory_space<vmem>>, vector<1x8x128xf32>
    %1 = vector.shape_cast %0 : vector<1x8x128xf32> to vector<8x128xf32>
    %c0_2 = arith.constant 0 : index
    %c0_3 = arith.constant 0 : index
    %2 = vector.load %arg3[%c0_2, %c0_3] : memref<1x128xf32, #tpu.memory_space<vmem>>, vector<1x128xf32>
    %3 = vector.broadcast %2 : vector<1x128xf32> to vector<8x128xf32>
    %4 = arith.mulf %1, %3 : vector<8x128xf32>
    %c0_4 = arith.constant 0 : index
    %c0_5 = arith.constant 0 : index
    %5 = vector.load %arg4[%c0_4, %c0_5] : memref<1x128xf32, #tpu.memory_space<vmem>>, vector<1x128xf32>
    %6 = vector.broadcast %5 : vector<1x128xf32> to vector<8x128xf32>
    %7 = arith.addf %4, %6 : vector<8x128xf32>
    %cst = arith.constant 0.000000e+00 : f32
    %8 = vector.broadcast %cst : f32 to vector<8x128xf32>
    %9 = arith.cmpf oge, %7, %8 : vector<8x128xf32>
    %cst_6 = arith.constant 2.000000e-01 : f32
    %10 = vector.broadcast %cst_6 : f32 to vector<8x128xf32>
    %11 = arith.mulf %10, %7 : vector<8x128xf32>
    %12 = arith.select %9, %7, %11 : vector<8x128xi1>, vector<8x128xf32>
    %13 = arith.truncf %12 : vector<8x128xf32> to vector<8x128xbf16>
    %14 = vector.shape_cast %13 : vector<8x128xbf16> to vector<1x8x128xbf16>
    %c0_7 = arith.constant 0 : index
    %c0_8 = arith.constant 0 : index
    %c0_9 = arith.constant 0 : index
    %15 = vector.load %arg5[%c0_7, %c0_8, %c0_9] : memref<1x8x128xbf16, #tpu.memory_space<vmem>>, vector<1x8x128xbf16>
    tpu.vector_store %arg5[%c0_7, %c0_8, %c0_9], %14 {strides = array<i32>} : memref<1x8x128xbf16, #tpu.memory_space<vmem>>, vector<1x8x128xbf16>,
    return
  }
  func.func @transform_0(%arg0: i32, %arg1: i32) -> (i32, i32, i32) {
    %c0_i32 = arith.constant 0 : i32
    %c0_i32_0 = arith.constant 0 : i32
    return %arg0, %arg1, %c0_i32 : i32, i32, i32
  }
  func.func @transform_1(%arg0: i32, %arg1: i32) -> (i32, i32) {
    %c0_i32 = arith.constant 0 : i32
    %c0_i32_0 = arith.constant 0 : i32
    %c0_i32_1 = arith.constant 0 : i32
    return %c0_i32, %c0_i32_0 : i32, i32
  }
  func.func @transform_2(%arg0: i32, %arg1: i32) -> (i32, i32) {
    %c0_i32 = arith.constant 0 : i32
    %c0_i32_0 = arith.constant 0 : i32
    %c0_i32_1 = arith.constant 0 : i32
    return %c0_i32, %c0_i32_0 : i32, i32
  }
  func.func @transform_3(%arg0: i32, %arg1: i32) -> (i32, i32, i32) {
    %c0_i32 = arith.constant 0 : i32
    %c0_i32_0 = arith.constant 0 : i32
    return %arg0, %arg1, %c0_i32 : i32, i32, i32
  }
}

module attributes {stable_mosaic.version = 11 : i64} {
  func.func @_mm_stats_kernel(%arg0: i32, %arg1: i32, %arg2: memref<1x8x256xbf16, #tpu.memory_space<vmem>>, %arg3: memref<1x256x128xbf16, #tpu.memory_space<vmem>>, %arg4: memref<1x8x128xf32, #tpu.memory_space<vmem>>, %arg5: memref<1x8x128xf32, #tpu.memory_space<vmem>>) attributes {dimension_semantics = [#tpu.dimension_semantics<parallel>, #tpu.dimension_semantics<parallel>], iteration_bounds = array<i64: 1, 1>, scalar_prefetch = 0 : i64, scratch_operands = 0 : i64, tpu.core_type = #tpu.core_type<tc>, window_params = [{transform_indices = @transform_0, window_bounds = array<i64: 1, 8, 256>}, {transform_indices = @transform_1, window_bounds = array<i64: 1, 256, 128>}, {transform_indices = @transform_2, window_bounds = array<i64: 1, 8, 128>}, {transform_indices = @transform_3, window_bounds = array<i64: 1, 8, 128>}]} {
    %c0 = arith.constant 0 : index
    %c0_0 = arith.constant 0 : index
    %c0_1 = arith.constant 0 : index
    %0 = vector.load %arg2[%c0, %c0_0, %c0_1] : memref<1x8x256xbf16, #tpu.memory_space<vmem>>, vector<1x8x256xbf16>
    %1 = vector.shape_cast %0 : vector<1x8x256xbf16> to vector<8x256xbf16>
    %c0_2 = arith.constant 0 : index
    %c0_3 = arith.constant 0 : index
    %c0_4 = arith.constant 0 : index
    %2 = vector.load %arg3[%c0_2, %c0_3, %c0_4] : memref<1x256x128xbf16, #tpu.memory_space<vmem>>, vector<1x256x128xbf16>
    %3 = vector.shape_cast %2 : vector<1x256x128xbf16> to vector<256x128xbf16>
    %cst = arith.constant dense<0.000000e+00> : vector<8x128xf32>
    %4 = tpu.matmul %1, %3, %cst {dimension_numbers = #tpu.dot_dimension_numbers<[1], [0], [0], [1], [0, 0, 1, 1], [], []>} : vector<8x256xbf16>, vector<256x128xbf16>, vector<8x128xf32> -> vector<8x128xf32>
    %5 = vector.shape_cast %4 : vector<8x128xf32> to vector<1x8x128xf32>
    %c0_5 = arith.constant 0 : index
    %c0_6 = arith.constant 0 : index
    %c0_7 = arith.constant 0 : index
    %6 = vector.load %arg4[%c0_5, %c0_6, %c0_7] : memref<1x8x128xf32, #tpu.memory_space<vmem>>, vector<1x8x128xf32>
    tpu.vector_store %arg4[%c0_5, %c0_6, %c0_7], %5 {strides = array<i32>} : memref<1x8x128xf32, #tpu.memory_space<vmem>>, vector<1x8x128xf32>,
    %cst_8 = arith.constant dense<0.000000e+00> : vector<128xf32>
    %7 = vector.multi_reduction <add>, %4, %cst_8 [0] : vector<8x128xf32> to vector<128xf32>
    %8 = vector.shape_cast %7 : vector<128xf32> to vector<1x128xf32>
    %9 = arith.mulf %4, %4 : vector<8x128xf32>
    %cst_9 = arith.constant dense<0.000000e+00> : vector<128xf32>
    %10 = vector.multi_reduction <add>, %9, %cst_9 [0] : vector<8x128xf32> to vector<128xf32>
    %11 = vector.shape_cast %10 : vector<128xf32> to vector<1x128xf32>
    %12 = tpu.iota {dimensions = array<i32: 0>} : vector<8x128xi32>
    %c0_i32 = arith.constant 0 : i32
    %13 = vector.broadcast %c0_i32 : i32 to vector<8x128xi32>
    %14 = arith.cmpi eq, %12, %13 : vector<8x128xi32>
    %c1_i32 = arith.constant 1 : i32
    %15 = vector.broadcast %c1_i32 : i32 to vector<8x128xi32>
    %16 = arith.cmpi eq, %12, %15 : vector<8x128xi32>
    %cst_10 = arith.constant 0.000000e+00 : f32
    %17 = vector.shape_cast %11 : vector<1x128xf32> to vector<1x128xf32>
    %18 = vector.broadcast %17 : vector<1x128xf32> to vector<8x128xf32>
    %19 = vector.broadcast %cst_10 : f32 to vector<8x128xf32>
    %20 = arith.select %16, %18, %19 : vector<8x128xi1>, vector<8x128xf32>
    %21 = vector.shape_cast %8 : vector<1x128xf32> to vector<1x128xf32>
    %22 = vector.broadcast %21 : vector<1x128xf32> to vector<8x128xf32>
    %23 = arith.select %14, %22, %20 : vector<8x128xi1>, vector<8x128xf32>
    %24 = vector.shape_cast %23 : vector<8x128xf32> to vector<1x8x128xf32>
    %c0_11 = arith.constant 0 : index
    %c0_12 = arith.constant 0 : index
    %c0_13 = arith.constant 0 : index
    %25 = vector.load %arg5[%c0_11, %c0_12, %c0_13] : memref<1x8x128xf32, #tpu.memory_space<vmem>>, vector<1x8x128xf32>
    tpu.vector_store %arg5[%c0_11, %c0_12, %c0_13], %24 {strides = array<i32>} : memref<1x8x128xf32, #tpu.memory_space<vmem>>, vector<1x8x128xf32>,
    return
  }
  func.func @transform_0(%arg0: i32, %arg1: i32) -> (i32, i32, i32) {
    %c0_i32 = arith.constant 0 : i32
    %c0_i32_0 = arith.constant 0 : i32
    return %arg0, %arg1, %c0_i32 : i32, i32, i32
  }
  func.func @transform_1(%arg0: i32, %arg1: i32) -> (i32, i32, i32) {
    %c0_i32 = arith.constant 0 : i32
    %c0_i32_0 = arith.constant 0 : i32
    %c0_i32_1 = arith.constant 0 : i32
    return %arg0, %c0_i32, %c0_i32_0 : i32, i32, i32
  }
  func.func @transform_2(%arg0: i32, %arg1: i32) -> (i32, i32, i32) {
    %c0_i32 = arith.constant 0 : i32
    %c0_i32_0 = arith.constant 0 : i32
    return %arg0, %arg1, %c0_i32 : i32, i32, i32
  }
  func.func @transform_3(%arg0: i32, %arg1: i32) -> (i32, i32, i32) {
    %c0_i32 = arith.constant 0 : i32
    %c0_i32_0 = arith.constant 0 : i32
    return %arg0, %arg1, %c0_i32 : i32, i32, i32
  }
}

module attributes {stable_mosaic.version = 11 : i64} {
  func.func @_mm_stats_kernel(%arg0: i32, %arg1: i32, %arg2: memref<1x8x144xbf16, #tpu.memory_space<vmem>>, %arg3: memref<1x144x128xbf16, #tpu.memory_space<vmem>>, %arg4: memref<1x8x128xf32, #tpu.memory_space<vmem>>, %arg5: memref<1x8x128xf32, #tpu.memory_space<vmem>>) attributes {dimension_semantics = [#tpu.dimension_semantics<parallel>, #tpu.dimension_semantics<parallel>], iteration_bounds = array<i64: 4, 1>, scalar_prefetch = 0 : i64, scratch_operands = 0 : i64, tpu.core_type = #tpu.core_type<tc>, window_params = [{transform_indices = @transform_0, window_bounds = array<i64: 1, 8, 144>}, {transform_indices = @transform_1, window_bounds = array<i64: 1, 144, 128>}, {transform_indices = @transform_2, window_bounds = array<i64: 1, 8, 128>}, {transform_indices = @transform_3, window_bounds = array<i64: 1, 8, 128>}]} {
    %c0 = arith.constant 0 : index
    %c0_0 = arith.constant 0 : index
    %c0_1 = arith.constant 0 : index
    %0 = vector.load %arg2[%c0, %c0_0, %c0_1] : memref<1x8x144xbf16, #tpu.memory_space<vmem>>, vector<1x8x144xbf16>
    %1 = vector.shape_cast %0 : vector<1x8x144xbf16> to vector<8x144xbf16>
    %c0_2 = arith.constant 0 : index
    %c0_3 = arith.constant 0 : index
    %c0_4 = arith.constant 0 : index
    %2 = vector.load %arg3[%c0_2, %c0_3, %c0_4] : memref<1x144x128xbf16, #tpu.memory_space<vmem>>, vector<1x144x128xbf16>
    %3 = vector.shape_cast %2 : vector<1x144x128xbf16> to vector<144x128xbf16>
    %cst = arith.constant dense<0.000000e+00> : vector<8x128xf32>
    %4 = tpu.matmul %1, %3, %cst {dimension_numbers = #tpu.dot_dimension_numbers<[1], [0], [0], [1], [0, 0, 1, 1], [], []>} : vector<8x144xbf16>, vector<144x128xbf16>, vector<8x128xf32> -> vector<8x128xf32>
    %5 = vector.shape_cast %4 : vector<8x128xf32> to vector<1x8x128xf32>
    %c0_5 = arith.constant 0 : index
    %c0_6 = arith.constant 0 : index
    %c0_7 = arith.constant 0 : index
    %6 = vector.load %arg4[%c0_5, %c0_6, %c0_7] : memref<1x8x128xf32, #tpu.memory_space<vmem>>, vector<1x8x128xf32>
    tpu.vector_store %arg4[%c0_5, %c0_6, %c0_7], %5 {strides = array<i32>} : memref<1x8x128xf32, #tpu.memory_space<vmem>>, vector<1x8x128xf32>,
    %cst_8 = arith.constant dense<0.000000e+00> : vector<128xf32>
    %7 = vector.multi_reduction <add>, %4, %cst_8 [0] : vector<8x128xf32> to vector<128xf32>
    %8 = vector.shape_cast %7 : vector<128xf32> to vector<1x128xf32>
    %9 = arith.mulf %4, %4 : vector<8x128xf32>
    %cst_9 = arith.constant dense<0.000000e+00> : vector<128xf32>
    %10 = vector.multi_reduction <add>, %9, %cst_9 [0] : vector<8x128xf32> to vector<128xf32>
    %11 = vector.shape_cast %10 : vector<128xf32> to vector<1x128xf32>
    %12 = tpu.iota {dimensions = array<i32: 0>} : vector<8x128xi32>
    %c0_i32 = arith.constant 0 : i32
    %13 = vector.broadcast %c0_i32 : i32 to vector<8x128xi32>
    %14 = arith.cmpi eq, %12, %13 : vector<8x128xi32>
    %c1_i32 = arith.constant 1 : i32
    %15 = vector.broadcast %c1_i32 : i32 to vector<8x128xi32>
    %16 = arith.cmpi eq, %12, %15 : vector<8x128xi32>
    %cst_10 = arith.constant 0.000000e+00 : f32
    %17 = vector.shape_cast %11 : vector<1x128xf32> to vector<1x128xf32>
    %18 = vector.broadcast %17 : vector<1x128xf32> to vector<8x128xf32>
    %19 = vector.broadcast %cst_10 : f32 to vector<8x128xf32>
    %20 = arith.select %16, %18, %19 : vector<8x128xi1>, vector<8x128xf32>
    %21 = vector.shape_cast %8 : vector<1x128xf32> to vector<1x128xf32>
    %22 = vector.broadcast %21 : vector<1x128xf32> to vector<8x128xf32>
    %23 = arith.select %14, %22, %20 : vector<8x128xi1>, vector<8x128xf32>
    %24 = vector.shape_cast %23 : vector<8x128xf32> to vector<1x8x128xf32>
    %c0_11 = arith.constant 0 : index
    %c0_12 = arith.constant 0 : index
    %c0_13 = arith.constant 0 : index
    %25 = vector.load %arg5[%c0_11, %c0_12, %c0_13] : memref<1x8x128xf32, #tpu.memory_space<vmem>>, vector<1x8x128xf32>
    tpu.vector_store %arg5[%c0_11, %c0_12, %c0_13], %24 {strides = array<i32>} : memref<1x8x128xf32, #tpu.memory_space<vmem>>, vector<1x8x128xf32>,
    return
  }
  func.func @transform_0(%arg0: i32, %arg1: i32) -> (i32, i32, i32) {
    %c0_i32 = arith.constant 0 : i32
    %c0_i32_0 = arith.constant 0 : i32
    return %arg0, %arg1, %c0_i32 : i32, i32, i32
  }
  func.func @transform_1(%arg0: i32, %arg1: i32) -> (i32, i32, i32) {
    %c0_i32 = arith.constant 0 : i32
    %c0_i32_0 = arith.constant 0 : i32
    %c0_i32_1 = arith.constant 0 : i32
    return %arg0, %c0_i32, %c0_i32_0 : i32, i32, i32
  }
  func.func @transform_2(%arg0: i32, %arg1: i32) -> (i32, i32, i32) {
    %c0_i32 = arith.constant 0 : i32
    %c0_i32_0 = arith.constant 0 : i32
    return %arg0, %arg1, %c0_i32 : i32, i32, i32
  }
  func.func @transform_3(%arg0: i32, %arg1: i32) -> (i32, i32, i32) {
    %c0_i32 = arith.constant 0 : i32
    %c0_i32_0 = arith.constant 0 : i32
    return %arg0, %arg1, %c0_i32 : i32, i32, i32
  }
}

module attributes {stable_mosaic.version = 11 : i64} {
  func.func @_bn_act_kernel(%arg0: i32, %arg1: i32, %arg2: memref<1x8x128xf32, #tpu.memory_space<vmem>>, %arg3: memref<1x128xf32, #tpu.memory_space<vmem>>, %arg4: memref<1x128xf32, #tpu.memory_space<vmem>>, %arg5: memref<1x8x128xbf16, #tpu.memory_space<vmem>>) attributes {dimension_semantics = [#tpu.dimension_semantics<parallel>, #tpu.dimension_semantics<parallel>], iteration_bounds = array<i64: 4, 1>, scalar_prefetch = 0 : i64, scratch_operands = 0 : i64, tpu.core_type = #tpu.core_type<tc>, window_params = [{transform_indices = @transform_0, window_bounds = array<i64: 1, 8, 128>}, {pipeline_mode = #tpu.pipeline_mode<synchronous>, transform_indices = @transform_1, window_bounds = array<i64: 1, 128>}, {pipeline_mode = #tpu.pipeline_mode<synchronous>, transform_indices = @transform_2, window_bounds = array<i64: 1, 128>}, {transform_indices = @transform_3, window_bounds = array<i64: 1, 8, 128>}]} {
    %c0 = arith.constant 0 : index
    %c0_0 = arith.constant 0 : index
    %c0_1 = arith.constant 0 : index
    %0 = vector.load %arg2[%c0, %c0_0, %c0_1] : memref<1x8x128xf32, #tpu.memory_space<vmem>>, vector<1x8x128xf32>
    %1 = vector.shape_cast %0 : vector<1x8x128xf32> to vector<8x128xf32>
    %c0_2 = arith.constant 0 : index
    %c0_3 = arith.constant 0 : index
    %2 = vector.load %arg3[%c0_2, %c0_3] : memref<1x128xf32, #tpu.memory_space<vmem>>, vector<1x128xf32>
    %3 = vector.broadcast %2 : vector<1x128xf32> to vector<8x128xf32>
    %4 = arith.mulf %1, %3 : vector<8x128xf32>
    %c0_4 = arith.constant 0 : index
    %c0_5 = arith.constant 0 : index
    %5 = vector.load %arg4[%c0_4, %c0_5] : memref<1x128xf32, #tpu.memory_space<vmem>>, vector<1x128xf32>
    %6 = vector.broadcast %5 : vector<1x128xf32> to vector<8x128xf32>
    %7 = arith.addf %4, %6 : vector<8x128xf32>
    %cst = arith.constant 0.000000e+00 : f32
    %8 = vector.broadcast %cst : f32 to vector<8x128xf32>
    %9 = arith.maximumf %7, %8 : vector<8x128xf32>
    %10 = arith.truncf %9 : vector<8x128xf32> to vector<8x128xbf16>
    %11 = vector.shape_cast %10 : vector<8x128xbf16> to vector<1x8x128xbf16>
    %c0_6 = arith.constant 0 : index
    %c0_7 = arith.constant 0 : index
    %c0_8 = arith.constant 0 : index
    %12 = vector.load %arg5[%c0_6, %c0_7, %c0_8] : memref<1x8x128xbf16, #tpu.memory_space<vmem>>, vector<1x8x128xbf16>
    tpu.vector_store %arg5[%c0_6, %c0_7, %c0_8], %11 {strides = array<i32>} : memref<1x8x128xbf16, #tpu.memory_space<vmem>>, vector<1x8x128xbf16>,
    return
  }
  func.func @transform_0(%arg0: i32, %arg1: i32) -> (i32, i32, i32) {
    %c0_i32 = arith.constant 0 : i32
    %c0_i32_0 = arith.constant 0 : i32
    return %arg0, %arg1, %c0_i32 : i32, i32, i32
  }
  func.func @transform_1(%arg0: i32, %arg1: i32) -> (i32, i32) {
    %c0_i32 = arith.constant 0 : i32
    %c0_i32_0 = arith.constant 0 : i32
    %c0_i32_1 = arith.constant 0 : i32
    return %c0_i32, %c0_i32_0 : i32, i32
  }
  func.func @transform_2(%arg0: i32, %arg1: i32) -> (i32, i32) {
    %c0_i32 = arith.constant 0 : i32
    %c0_i32_0 = arith.constant 0 : i32
    %c0_i32_1 = arith.constant 0 : i32
    return %c0_i32, %c0_i32_0 : i32, i32
  }
  func.func @transform_3(%arg0: i32, %arg1: i32) -> (i32, i32, i32) {
    %c0_i32 = arith.constant 0 : i32
    %c0_i32_0 = arith.constant 0 : i32
    return %arg0, %arg1, %c0_i32 : i32, i32, i32
  }
}

module attributes {stable_mosaic.version = 11 : i64} {
  func.func @_mm_stats_kernel(%arg0: i32, %arg1: i32, %arg2: memref<1x32x192xbf16, #tpu.memory_space<vmem>>, %arg3: memref<1x192x128xbf16, #tpu.memory_space<vmem>>, %arg4: memref<1x32x128xf32, #tpu.memory_space<vmem>>, %arg5: memref<1x8x128xf32, #tpu.memory_space<vmem>>) attributes {dimension_semantics = [#tpu.dimension_semantics<parallel>, #tpu.dimension_semantics<parallel>], iteration_bounds = array<i64: 4, 1>, scalar_prefetch = 0 : i64, scratch_operands = 0 : i64, tpu.core_type = #tpu.core_type<tc>, window_params = [{transform_indices = @transform_0, window_bounds = array<i64: 1, 32, 192>}, {transform_indices = @transform_1, window_bounds = array<i64: 1, 192, 128>}, {transform_indices = @transform_2, window_bounds = array<i64: 1, 32, 128>}, {transform_indices = @transform_3, window_bounds = array<i64: 1, 8, 128>}]} {
    %c0 = arith.constant 0 : index
    %c0_0 = arith.constant 0 : index
    %c0_1 = arith.constant 0 : index
    %0 = vector.load %arg2[%c0, %c0_0, %c0_1] : memref<1x32x192xbf16, #tpu.memory_space<vmem>>, vector<1x32x192xbf16>
    %1 = vector.shape_cast %0 : vector<1x32x192xbf16> to vector<32x192xbf16>
    %c0_2 = arith.constant 0 : index
    %c0_3 = arith.constant 0 : index
    %c0_4 = arith.constant 0 : index
    %2 = vector.load %arg3[%c0_2, %c0_3, %c0_4] : memref<1x192x128xbf16, #tpu.memory_space<vmem>>, vector<1x192x128xbf16>
    %3 = vector.shape_cast %2 : vector<1x192x128xbf16> to vector<192x128xbf16>
    %cst = arith.constant dense<0.000000e+00> : vector<32x128xf32>
    %4 = tpu.matmul %1, %3, %cst {dimension_numbers = #tpu.dot_dimension_numbers<[1], [0], [0], [1], [0, 0, 1, 1], [], []>} : vector<32x192xbf16>, vector<192x128xbf16>, vector<32x128xf32> -> vector<32x128xf32>
    %5 = vector.shape_cast %4 : vector<32x128xf32> to vector<1x32x128xf32>
    %c0_5 = arith.constant 0 : index
    %c0_6 = arith.constant 0 : index
    %c0_7 = arith.constant 0 : index
    %6 = vector.load %arg4[%c0_5, %c0_6, %c0_7] : memref<1x32x128xf32, #tpu.memory_space<vmem>>, vector<1x32x128xf32>
    tpu.vector_store %arg4[%c0_5, %c0_6, %c0_7], %5 {strides = array<i32>} : memref<1x32x128xf32, #tpu.memory_space<vmem>>, vector<1x32x128xf32>,
    %cst_8 = arith.constant dense<0.000000e+00> : vector<128xf32>
    %7 = vector.multi_reduction <add>, %4, %cst_8 [0] : vector<32x128xf32> to vector<128xf32>
    %8 = vector.shape_cast %7 : vector<128xf32> to vector<1x128xf32>
    %9 = arith.mulf %4, %4 : vector<32x128xf32>
    %cst_9 = arith.constant dense<0.000000e+00> : vector<128xf32>
    %10 = vector.multi_reduction <add>, %9, %cst_9 [0] : vector<32x128xf32> to vector<128xf32>
    %11 = vector.shape_cast %10 : vector<128xf32> to vector<1x128xf32>
    %12 = tpu.iota {dimensions = array<i32: 0>} : vector<8x128xi32>
    %c0_i32 = arith.constant 0 : i32
    %13 = vector.broadcast %c0_i32 : i32 to vector<8x128xi32>
    %14 = arith.cmpi eq, %12, %13 : vector<8x128xi32>
    %c1_i32 = arith.constant 1 : i32
    %15 = vector.broadcast %c1_i32 : i32 to vector<8x128xi32>
    %16 = arith.cmpi eq, %12, %15 : vector<8x128xi32>
    %cst_10 = arith.constant 0.000000e+00 : f32
    %17 = vector.shape_cast %11 : vector<1x128xf32> to vector<1x128xf32>
    %18 = vector.broadcast %17 : vector<1x128xf32> to vector<8x128xf32>
    %19 = vector.broadcast %cst_10 : f32 to vector<8x128xf32>
    %20 = arith.select %16, %18, %19 : vector<8x128xi1>, vector<8x128xf32>
    %21 = vector.shape_cast %8 : vector<1x128xf32> to vector<1x128xf32>
    %22 = vector.broadcast %21 : vector<1x128xf32> to vector<8x128xf32>
    %23 = arith.select %14, %22, %20 : vector<8x128xi1>, vector<8x128xf32>
    %24 = vector.shape_cast %23 : vector<8x128xf32> to vector<1x8x128xf32>
    %c0_11 = arith.constant 0 : index
    %c0_12 = arith.constant 0 : index
    %c0_13 = arith.constant 0 : index
    %25 = vector.load %arg5[%c0_11, %c0_12, %c0_13] : memref<1x8x128xf32, #tpu.memory_space<vmem>>, vector<1x8x128xf32>
    tpu.vector_store %arg5[%c0_11, %c0_12, %c0_13], %24 {strides = array<i32>} : memref<1x8x128xf32, #tpu.memory_space<vmem>>, vector<1x8x128xf32>,
    return
  }
  func.func @transform_0(%arg0: i32, %arg1: i32) -> (i32, i32, i32) {
    %c0_i32 = arith.constant 0 : i32
    %c0_i32_0 = arith.constant 0 : i32
    return %arg0, %arg1, %c0_i32 : i32, i32, i32
  }
  func.func @transform_1(%arg0: i32, %arg1: i32) -> (i32, i32, i32) {
    %c0_i32 = arith.constant 0 : i32
    %c0_i32_0 = arith.constant 0 : i32
    %c0_i32_1 = arith.constant 0 : i32
    return %arg0, %c0_i32, %c0_i32_0 : i32, i32, i32
  }
  func.func @transform_2(%arg0: i32, %arg1: i32) -> (i32, i32, i32) {
    %c0_i32 = arith.constant 0 : i32
    %c0_i32_0 = arith.constant 0 : i32
    return %arg0, %arg1, %c0_i32 : i32, i32, i32
  }
  func.func @transform_3(%arg0: i32, %arg1: i32) -> (i32, i32, i32) {
    %c0_i32 = arith.constant 0 : i32
    %c0_i32_0 = arith.constant 0 : i32
    return %arg0, %arg1, %c0_i32 : i32, i32, i32
  }
}

module attributes {stable_mosaic.version = 11 : i64} {
  func.func @_bn_act_kernel(%arg0: i32, %arg1: i32, %arg2: memref<1x32x128xf32, #tpu.memory_space<vmem>>, %arg3: memref<1x128xf32, #tpu.memory_space<vmem>>, %arg4: memref<1x128xf32, #tpu.memory_space<vmem>>, %arg5: memref<1x32x128xbf16, #tpu.memory_space<vmem>>) attributes {dimension_semantics = [#tpu.dimension_semantics<parallel>, #tpu.dimension_semantics<parallel>], iteration_bounds = array<i64: 4, 1>, scalar_prefetch = 0 : i64, scratch_operands = 0 : i64, tpu.core_type = #tpu.core_type<tc>, window_params = [{transform_indices = @transform_0, window_bounds = array<i64: 1, 32, 128>}, {pipeline_mode = #tpu.pipeline_mode<synchronous>, transform_indices = @transform_1, window_bounds = array<i64: 1, 128>}, {pipeline_mode = #tpu.pipeline_mode<synchronous>, transform_indices = @transform_2, window_bounds = array<i64: 1, 128>}, {transform_indices = @transform_3, window_bounds = array<i64: 1, 32, 128>}]} {
    %c0 = arith.constant 0 : index
    %c0_0 = arith.constant 0 : index
    %c0_1 = arith.constant 0 : index
    %0 = vector.load %arg2[%c0, %c0_0, %c0_1] : memref<1x32x128xf32, #tpu.memory_space<vmem>>, vector<1x32x128xf32>
    %1 = vector.shape_cast %0 : vector<1x32x128xf32> to vector<32x128xf32>
    %c0_2 = arith.constant 0 : index
    %c0_3 = arith.constant 0 : index
    %2 = vector.load %arg3[%c0_2, %c0_3] : memref<1x128xf32, #tpu.memory_space<vmem>>, vector<1x128xf32>
    %3 = vector.broadcast %2 : vector<1x128xf32> to vector<32x128xf32>
    %4 = arith.mulf %1, %3 : vector<32x128xf32>
    %c0_4 = arith.constant 0 : index
    %c0_5 = arith.constant 0 : index
    %5 = vector.load %arg4[%c0_4, %c0_5] : memref<1x128xf32, #tpu.memory_space<vmem>>, vector<1x128xf32>
    %6 = vector.broadcast %5 : vector<1x128xf32> to vector<32x128xf32>
    %7 = arith.addf %4, %6 : vector<32x128xf32>
    %cst = arith.constant 0.000000e+00 : f32
    %8 = vector.broadcast %cst : f32 to vector<32x128xf32>
    %9 = arith.maximumf %7, %8 : vector<32x128xf32>
    %10 = arith.truncf %9 : vector<32x128xf32> to vector<32x128xbf16>
    %11 = vector.shape_cast %10 : vector<32x128xbf16> to vector<1x32x128xbf16>
    %c0_6 = arith.constant 0 : index
    %c0_7 = arith.constant 0 : index
    %c0_8 = arith.constant 0 : index
    %12 = vector.load %arg5[%c0_6, %c0_7, %c0_8] : memref<1x32x128xbf16, #tpu.memory_space<vmem>>, vector<1x32x128xbf16>
    tpu.vector_store %arg5[%c0_6, %c0_7, %c0_8], %11 {strides = array<i32>} : memref<1x32x128xbf16, #tpu.memory_space<vmem>>, vector<1x32x128xbf16>,
    return
  }
  func.func @transform_0(%arg0: i32, %arg1: i32) -> (i32, i32, i32) {
    %c0_i32 = arith.constant 0 : i32
    %c0_i32_0 = arith.constant 0 : i32
    return %arg0, %arg1, %c0_i32 : i32, i32, i32
  }
  func.func @transform_1(%arg0: i32, %arg1: i32) -> (i32, i32) {
    %c0_i32 = arith.constant 0 : i32
    %c0_i32_0 = arith.constant 0 : i32
    %c0_i32_1 = arith.constant 0 : i32
    return %c0_i32, %c0_i32_0 : i32, i32
  }
  func.func @transform_2(%arg0: i32, %arg1: i32) -> (i32, i32) {
    %c0_i32 = arith.constant 0 : i32
    %c0_i32_0 = arith.constant 0 : i32
    %c0_i32_1 = arith.constant 0 : i32
    return %c0_i32, %c0_i32_0 : i32, i32
  }
  func.func @transform_3(%arg0: i32, %arg1: i32) -> (i32, i32, i32) {
    %c0_i32 = arith.constant 0 : i32
    %c0_i32_0 = arith.constant 0 : i32
    return %arg0, %arg1, %c0_i32 : i32, i32, i32
  }
}

module attributes {stable_mosaic.version = 11 : i64} {
  func.func @_mm_bias_tanh_kernel(%arg0: i32, %arg1: i32, %arg2: memref<1x64x64xbf16, #tpu.memory_space<vmem>>, %arg3: memref<1x64x128xbf16, #tpu.memory_space<vmem>>, %arg4: memref<1x128xf32, #tpu.memory_space<vmem>>, %arg5: memref<1x64x128xf32, #tpu.memory_space<vmem>>) attributes {dimension_semantics = [#tpu.dimension_semantics<parallel>, #tpu.dimension_semantics<parallel>], iteration_bounds = array<i64: 4, 2>, scalar_prefetch = 0 : i64, scratch_operands = 0 : i64, tpu.core_type = #tpu.core_type<tc>, window_params = [{transform_indices = @transform_0, window_bounds = array<i64: 1, 64, 64>}, {transform_indices = @transform_1, window_bounds = array<i64: 1, 64, 128>}, {pipeline_mode = #tpu.pipeline_mode<synchronous>, transform_indices = @transform_2, window_bounds = array<i64: 1, 128>}, {transform_indices = @transform_3, window_bounds = array<i64: 1, 64, 128>}]} {
    %c0 = arith.constant 0 : index
    %c0_0 = arith.constant 0 : index
    %c0_1 = arith.constant 0 : index
    %0 = vector.load %arg2[%c0, %c0_0, %c0_1] : memref<1x64x64xbf16, #tpu.memory_space<vmem>>, vector<1x64x64xbf16>
    %1 = vector.shape_cast %0 : vector<1x64x64xbf16> to vector<64x64xbf16>
    %c0_2 = arith.constant 0 : index
    %c0_3 = arith.constant 0 : index
    %c0_4 = arith.constant 0 : index
    %2 = vector.load %arg3[%c0_2, %c0_3, %c0_4] : memref<1x64x128xbf16, #tpu.memory_space<vmem>>, vector<1x64x128xbf16>
    %3 = vector.shape_cast %2 : vector<1x64x128xbf16> to vector<64x128xbf16>
    %cst = arith.constant dense<0.000000e+00> : vector<64x128xf32>
    %4 = tpu.matmul %1, %3, %cst {dimension_numbers = #tpu.dot_dimension_numbers<[1], [0], [0], [1], [0, 0, 1, 1], [], []>} : vector<64x64xbf16>, vector<64x128xbf16>, vector<64x128xf32> -> vector<64x128xf32>
    %c0_5 = arith.constant 0 : index
    %c0_6 = arith.constant 0 : index
    %5 = vector.load %arg4[%c0_5, %c0_6] : memref<1x128xf32, #tpu.memory_space<vmem>>, vector<1x128xf32>
    %6 = vector.broadcast %5 : vector<1x128xf32> to vector<64x128xf32>
    %7 = arith.addf %4, %6 : vector<64x128xf32>
    %8 = math.tanh %7 : vector<64x128xf32>
    %9 = vector.shape_cast %8 : vector<64x128xf32> to vector<1x64x128xf32>
    %c0_7 = arith.constant 0 : index
    %c0_8 = arith.constant 0 : index
    %c0_9 = arith.constant 0 : index
    %10 = vector.load %arg5[%c0_7, %c0_8, %c0_9] : memref<1x64x128xf32, #tpu.memory_space<vmem>>, vector<1x64x128xf32>
    tpu.vector_store %arg5[%c0_7, %c0_8, %c0_9], %9 {strides = array<i32>} : memref<1x64x128xf32, #tpu.memory_space<vmem>>, vector<1x64x128xf32>,
    return
  }
  func.func @transform_0(%arg0: i32, %arg1: i32) -> (i32, i32, i32) {
    %c0_i32 = arith.constant 0 : i32
    %c0_i32_0 = arith.constant 0 : i32
    return %arg0, %arg1, %c0_i32 : i32, i32, i32
  }
  func.func @transform_1(%arg0: i32, %arg1: i32) -> (i32, i32, i32) {
    %c0_i32 = arith.constant 0 : i32
    %c0_i32_0 = arith.constant 0 : i32
    %c0_i32_1 = arith.constant 0 : i32
    return %arg0, %c0_i32, %c0_i32_0 : i32, i32, i32
  }
  func.func @transform_2(%arg0: i32, %arg1: i32) -> (i32, i32) {
    %c0_i32 = arith.constant 0 : i32
    %c0_i32_0 = arith.constant 0 : i32
    %c0_i32_1 = arith.constant 0 : i32
    return %c0_i32, %c0_i32_0 : i32, i32
  }
  func.func @transform_3(%arg0: i32, %arg1: i32) -> (i32, i32, i32) {
    %c0_i32 = arith.constant 0 : i32
    %c0_i32_0 = arith.constant 0 : i32
    return %arg0, %arg1, %c0_i32 : i32, i32, i32
  }
}

</mosaic_0001>

<bundles_post_ra>
// kernel: modifier_forward.11
= control target key start
LH: loop header
LB: loop body
LE: loop exit
PB: predicated region body
PF: predicated region fallthrough
CT: control target
= control target key end

     0   :  { %s673_s12 = smov 0   ;;  %s675_s13 = smov 0   ;;  %s733_s0 = inlined_call_operand.vmem [shape: bf16[1,128,48], index: 0, kind: input, shape index: {}]   ;;  %s734_s1 = inlined_call_operand.vmem [shape: bf16[1,48,128], index: 1, kind: input, shape index: {}]   ;;  %s735_s2 = inlined_call_operand.vmem [shape: f32[1,128,128], index: 2, kind: output, shape index: {0}]   ;;  %s736_s3 = inlined_call_operand.vmem [shape: f32[1,16,128], index: 3, kind: output, shape index: {1}]  }
   0x1   :  { %s677_s14 = smov 0  }
   0x2 LB: > { %s23_s15 = sadd.s32 1, %s647_s13  ;;  %p549_p0 = scmp.ge.s32.totalorder %s651_s14, 1  ;;  %s651_s14 = sphi %s677_s14, %s14_s14   ;;  %s647_s13 = sphi %s675_s13, %s738_s13   ;;  %s643_s12 = sphi %s673_s12, %s737_s12  }
   0x3   : > { %p24_p1 = scmp.ge.s32.totalorder %s23_s15, 2  ;;  %p173_p2 = scmp.lt.s32.totalorder %s651_s14, 3 }
   0x5   : > { %s740_s15 = smov (%p24_p1, %s23_s15), 0  ;;  %p174_p3 = pnand %p549_p0, %p173_p2 }
   0x6   : > { %s550_s18 = sshll.u32 (!%p174_p3), %s643_s12, 3  ;;  %p245_p5 = scmp.lt.s32.totalorder (!%p174_p3), %s643_s12, 1 }
   0x7   : > { %177 = sbr.rel (%p174_p3) target bundleno = 189 (0xbd), region = 28  ;;  %p221_p4 = scmp.lt.s32.totalorder (!%p174_p3), %s550_s18, 15 }
   0xc   : > { %v595_v0 = vld [vmem:[%s734_s1 + $0x10] sm:$0xff]  ;;  %v594_v1 = vld [vmem:[%s734_s1 + $0x8] sm:$0xff]  ;;  %s742_s18 = smov (!%p221_p4, %s550_s18), 15  ;;  %v593_v2 = vld [vmem:[%s734_s1] sm:$0xff]  ;;  %vm304_vm0 = vcmask 392192   ;;  %v388_v40 = vlaneseq  ;;  %s744_s12 = smov (!%p245_p5, %s643_s12), 1 }
   0xd   : > { %322 = vmatpush.bf16.msra.mxu0 %v595_v0  ;;  %596 = vmatpush.bf16.msra.mxu1 %v595_v0  ;;  %s551_s21 = sshll.u32 %s742_s18, 2  ;;  %s553_s27 = sshll.u32 %s742_s18, 3 }
   0xe   : > { %597 = vmatpush.bf16.msra.mxu2 %v595_v0  ;;  %598 = vmatpush.bf16.msra.mxu3 %v595_v0  ;;  %s226_s26 = scalar_lea.vmem %s733_s0, %s551_s21  ;;  %s709_s30 = scalar_lea.vmem %s735_s2, %s553_s27  ;;  %v389_v45 = vshrl.u32 %v388_v40, 7 }
   0xf   : > { %v589_v3 = vld [vmem:[%s226_s26] sm:$0xff]  ;;  %v590_v4 = vld [vmem:[%s226_s26 + $0x8] sm:$0xff]  ;;  %v591_v5 = vld [vmem:[%s226_s26 + $0x10] sm:$0xff]  ;;  %s554_s4 = sshll.u32 %s744_s12, 3 }
  0x10   : > { %v592_v6 = vld [vmem:[%s226_s26 + $0x18] sm:$0xff]  ;;  %vm391_vm1 = vcmp.eq.s32.totalorder %v389_v45, 1  ;;  %vm390_vm2 = vcmp.eq.s32.totalorder %v389_v45, 0  ;;  %s250_s7 = scalar_lea.vmem %s736_s3, %s554_s4 }
  0x11   : > { %323 = vmatpush.bf16.msra.mxu0 %v594_v1  ;;  %599 = vmatpush.bf16.msra.mxu1 %v594_v1 }
  0x12   : > { %600 = vmatpush.bf16.msra.mxu2 %v594_v1  ;;  %601 = vmatpush.bf16.msra.mxu3 %v594_v1 }
  0x15   : > { %324 = vmatpush.bf16.msra.mxu0 %v593_v2  ;;  %602 = vmatpush.bf16.msra.mxu1 %v593_v2 }
  0x16   : > { %603 = vmatpush.bf16.msra.mxu2 %v593_v2  ;;  %604 = vmatpush.bf16.msra.mxu3 %v593_v2 }
  0x18   : > { %583 = vmatmul.msk.bf16.vlgmr.msra.gmra.mxu0 %vm304_vm0, %v589_v3  ;;  %584 = vmatmul.msk.bf16.vlgmr.msra.gmra.mxu1 %vm304_vm0, %v590_v4 }
  0x19   : > { %585 = vmatmul.msk.bf16.vlgmr.msra.gmra.mxu2 %vm304_vm0, %v591_v5  ;;  %586 = vmatmul.msk.bf16.vlgmr.msra.gmra.mxu3 %vm304_vm0, %v592_v6 }
  0x95   : > { %v326_v7 = vpop.f32.mrf.mxu0  ;;  %v331_v8 = vpop.f32.mrf.mxu1 }
  0x96   : > { %346 = vst [vmem:[%s709_s30] sm:$0xff] %v326_v7  ;;  %v367_v13 = vmul.f32 %v326_v7, %v326_v7  ;;  %v369_v16 = vmul.f32 %v331_v8, %v331_v8 }
  0x97   : > { %348 = vst [vmem:[%s709_s30 + $0x10] sm:$0xff] %v331_v8 }
  0x9c   : > { %v336_v9 = vpop.f32.mrf.mxu2  ;;  %v341_v10 = vpop.f32.mrf.mxu3 }
  0x9d   : > { %350 = vst [vmem:[%s709_s30 + $0x20] sm:$0xff] %v336_v9  ;;  %v328_v11 = vpop.f32.mrf.mxu0  ;;  %v333_v12 = vpop.f32.mrf.mxu1  ;;  %v371_v22 = vmul.f32 %v336_v9, %v336_v9  ;;  %v373_v30 = vmul.f32 %v341_v10, %v341_v10 }
  0x9e   : > { %352 = vst [vmem:[%s709_s30 + $0x30] sm:$0xff] %v341_v10  ;;  %v354_v14 = vadd.f32 %v328_v11, %v326_v7  ;;  %v368_v15 = vmul.f32 %v328_v11, %v328_v11  ;;  %v370_v20 = vmul.f32 %v333_v12, %v333_v12 }
  0x9f   : > { %347 = vst [vmem:[%s709_s30 + $0x8] sm:$0xff] %v328_v11 }
  0xa0   : > { %v375_v17 = vadd.f32 %v368_v15, %v367_v13  ;;  %349 = vst [vmem:[%s709_s30 + $0x18] sm:$0xff] %v333_v12  ;;  %v355_v18 = vadd.f32 %v354_v14, %v331_v8 }
  0xa2   : > { %v356_v19 = vadd.f32 %v355_v18, %v333_v12  ;;  %v376_v21 = vadd.f32 %v375_v17, %v369_v16 }
  0xa4   : > { %v377_v23 = vadd.f32 %v376_v21, %v370_v20  ;;  %v338_v24 = vpop.f32.mrf.mxu2  ;;  %v357_v25 = vadd.f32 %v356_v19, %v336_v9  ;;  %v343_v26 = vpop.f32.mrf.mxu3 }
  0xa5   : > { %351 = vst [vmem:[%s709_s30 + $0x28] sm:$0xff] %v338_v24  ;;  %v372_v28 = vmul.f32 %v338_v24, %v338_v24  ;;  %v374_v34 = vmul.f32 %v343_v26, %v343_v26 }
  0xa6   : > { %v358_v27 = vadd.f32 %v357_v25, %v338_v24  ;;  %v378_v29 = vadd.f32 %v377_v23, %v371_v22  ;;  %353 = vst [vmem:[%s709_s30 + $0x38] sm:$0xff] %v343_v26 }
  0xa8   : > { %v379_v31 = vadd.f32 %v378_v29, %v372_v28  ;;  %v359_v32 = vadd.f32 %v358_v27, %v341_v10 }
  0xaa   : > { %v360_v33 = vadd.f32 %v359_v32, %v343_v26  ;;  %v380_v35 = vadd.f32 %v379_v31, %v373_v30 }
  0xac   : > { %v361_v36 = vrot.slane %v360_v33, 4  ;;  %v381_v37 = vadd.f32 %v380_v35, %v374_v34 }
  0xae   : > { %v362_v38 = vadd.f32 %v361_v36, %v360_v33  ;;  %v382_v39 = vrot.slane %v381_v37, 4 }
  0xb0   : > { %v363_v41 = vrot.slane %v362_v38, 2  ;;  %v383_v42 = vadd.f32 %v382_v39, %v381_v37 }
  0xb2   : > { %v364_v43 = vadd.f32 %v363_v41, %v362_v38  ;;  %v384_v44 = vrot.slane %v383_v42, 2 }
  0xb4   : > { %v385_v46 = vadd.f32 %v384_v44, %v383_v42  ;;  %v365_v47 = vrot.slane %v364_v43, 1 }
  0xb6   : > { %v386_v48 = vrot.slane %v385_v46, 1  ;;  %v366_v50 = vadd.f32 %v365_v47, %v364_v43 }
  0xb8   : > { %v387_v49 = vadd.f32 %v386_v48, %v385_v46 }
  0xba   : > { %v392_v51 = vsel %vm391_vm1, %v387_v49, 0.0 }
  0xbb   : > { %v393_v52 = vsel %vm390_vm2, %v366_v50, %v392_v51 }
  0xbc   : > { %394 = vst [vmem:[%s250_s7] sm:$0xff] %v393_v52 }
  0xbd PF: > { %s14_s14 = sadd.s32 1, %s651_s14   ;;  %s737_s12 = smov %s647_s13 }
  0xbe   : > { %p11_p6 = scmp.ge.s32.totalorder %s14_s14, 4   ;;  %s738_s13 = smov %s740_s15 }
  0xc0   :  { %13 = sbr.rel (!%p11_p6) target bundleno = 2 (0x2), region = 73 }

// kernel: modifier_forward.12
= control target key start
LH: loop header
LB: loop body
LE: loop exit
PB: predicated region body
PF: predicated region fallthrough
CT: control target
= control target key end

     0   :  { %s473_s12 = smov 0   ;;  %s475_s13 = smov 0   ;;  %s516_s0 = inlined_call_operand.vmem [shape: f32[1,128,128], index: 0, kind: input, shape index: {}]   ;;  %s517_s1 = inlined_call_operand.vmem [shape: f32[1,128], index: 1, kind: input, shape index: {}]   ;;  %s518_s2 = inlined_call_operand.vmem [shape: f32[1,128], index: 2, kind: input, shape index: {}]   ;;  %s519_s3 = inlined_call_operand.vmem [shape: bf16[1,128,128], index: 3, kind: output, shape index: {}]  }
   0x1   :  { %s477_s14 = smov 0  }
   0x2 LB: > { %s22_s15 = sadd.s32 1, %s447_s13  ;;  %p373_p0 = scmp.ge.s32.totalorder %s451_s14, 1  ;;  %s451_s14 = sphi %s477_s14, %s13_s14   ;;  %s447_s13 = sphi %s475_s13, %s521_s13   ;;  %s443_s12 = sphi %s473_s12, %s520_s12  }
   0x3   : > { %p23_p1 = scmp.ge.s32.totalorder %s22_s15, 2  ;;  %p158_p2 = scmp.lt.s32.totalorder %s451_s14, 3 }
   0x5   : > { %s523_s15 = smov (%p23_p1, %s22_s15), 0  ;;  %p159_p3 = pnand %p373_p0, %p158_p2 }
   0x6   : > { %s374_s16 = sshll.u32 (!%p159_p3), %s443_s12, 3 }
   0x7   : > { %162 = sbr.rel (%p159_p3) target bundleno = 33 (0x21), region = 32  ;;  %p193_p4 = scmp.lt.s32.totalorder (!%p159_p3), %s374_s16, 15 }
   0xc   : > { %s525_s16 = smov (!%p193_p4, %s374_s16), 15  ;;  %v427_v0 = vld [vmem:[%s517_s1] ss:$0 sm:$0xff] }
   0xd   : > { %s375_s19 = sshll.u32 %s525_s16, 3  ;;  %v428_v1 = vld [vmem:[%s518_s2] ss:$0 sm:$0xff]  ;;  %s377_s25 = sshll.u32 %s525_s16, 2 }
   0xe   : > { %s198_s22 = scalar_lea.vmem %s516_s0, %s375_s19  ;;  %s208_s28 = scalar_lea.vmem %s519_s3, %s377_s25 }
   0xf   : > { %v210_v2 = vld [vmem:[%s198_s22] sm:$0xff]  ;;  %v211_v3 = vld [vmem:[%s198_s22 + $0x8] sm:$0xff]  ;;  %v212_v4 = vld [vmem:[%s198_s22 + $0x10] sm:$0xff] }
  0x10   : > { %v222_v5 = vmul.f32 %v427_v0, %v210_v2  ;;  %v223_v6 = vmul.f32 %v427_v0, %v211_v3  ;;  %v213_v7 = vld [vmem:[%s198_s22 + $0x18] sm:$0xff]  ;;  %v224_v8 = vmul.f32 %v427_v0, %v212_v4  ;;  %v214_v9 = vld [vmem:[%s198_s22 + $0x20] sm:$0xff]  ;;  %v215_v10 = vld [vmem:[%s198_s22 + $0x28] sm:$0xff] }
  0x11   : > { %v225_v11 = vmul.f32 %v427_v0, %v213_v7  ;;  %v226_v12 = vmul.f32 %v427_v0, %v214_v9  ;;  %v227_v13 = vmul.f32 %v427_v0, %v215_v10  ;;  %v216_v14 = vld [vmem:[%s198_s22 + $0x30] sm:$0xff]  ;;  %v217_v15 = vld [vmem:[%s198_s22 + $0x38] sm:$0xff] }
  0x12   : > { %v234_v16 = vadd.f32 %v428_v1, %v222_v5  ;;  %v235_v17 = vadd.f32 %v428_v1, %v223_v6  ;;  %v236_v18 = vadd.f32 %v428_v1, %v224_v8  ;;  %v228_v19 = vmul.f32 %v427_v0, %v216_v14 }
  0x13   : > { %v237_v20 = vadd.f32 %v428_v1, %v225_v11  ;;  %v238_v21 = vadd.f32 %v428_v1, %v226_v12  ;;  %v239_v22 = vadd.f32 %v428_v1, %v227_v13  ;;  %v229_v23 = vmul.f32 %v427_v0, %v217_v15 }
  0x14   : > { %vm242_vm0 = vcmp.ge.f32.partialorder %v234_v16, 0.0  ;;  %vm243_vm1 = vcmp.ge.f32.partialorder %v235_v17, 0.0  ;;  %v250_v24 = vmul.f32 0.2, %v234_v16  ;;  %v251_v25 = vmul.f32 0.2, %v235_v17 }
  0x15   : > { %vm244_vm2 = vcmp.ge.f32.partialorder %v236_v18, 0.0  ;;  %vm245_vm3 = vcmp.ge.f32.partialorder %v237_v20, 0.0  ;;  %v252_v26 = vmul.f32 0.2, %v236_v18  ;;  %v253_v27 = vmul.f32 0.2, %v237_v20 }
  0x16   : > { %v258_v28 = vsel %vm242_vm0, %v234_v16, %v250_v24  ;;  %v259_v29 = vsel %vm243_vm1, %v235_v17, %v251_v25  ;;  %vm246_vm4 = vcmp.ge.f32.partialorder %v238_v21, 0.0  ;;  %vm247_vm5 = vcmp.ge.f32.partialorder %v239_v22, 0.0 }
  0x17   : > { %v383_v30 = vpack.c.bf16 %v259_v29, %v258_v28  ;;  %v260_v31 = vsel %vm244_vm2, %v236_v18, %v252_v26  ;;  %v261_v32 = vsel %vm245_vm3, %v237_v20, %v253_v27  ;;  %v254_v33 = vmul.f32 0.2, %v238_v21 }
  0x18   : > { %v388_v34 = vpack.c.bf16 %v261_v32, %v260_v31  ;;  %v255_v35 = vmul.f32 0.2, %v239_v22  ;;  %v240_v36 = vadd.f32 %v428_v1, %v228_v19  ;;  %v241_v37 = vadd.f32 %v428_v1, %v229_v23 }
  0x19   : > { %384 = vst [vmem:[%s208_s28] sm:$0xff] %v383_v30   ;;  %v262_v38 = vsel %vm246_vm4, %v238_v21, %v254_v33 }
  0x1a   : > { %400 = vst [vmem:[%s208_s28 + $0x8] sm:$0xff] %v388_v34   ;;  %v263_v39 = vsel %vm247_vm5, %v239_v22, %v255_v35  ;;  %vm248_vm6 = vcmp.ge.f32.partialorder %v240_v36, 0.0  ;;  %vm249_vm7 = vcmp.ge.f32.partialorder %v241_v37, 0.0  ;;  %v256_v40 = vmul.f32 0.2, %v240_v36 }
  0x1b   : > { %v393_v41 = vpack.c.bf16 %v263_v39, %v262_v38  ;;  %v257_v42 = vmul.f32 0.2, %v241_v37 }
  0x1c   : > { %v264_v43 = vsel %vm248_vm6, %v240_v36, %v256_v40 }
  0x1d   : > { %401 = vst [vmem:[%s208_s28 + $0x10] sm:$0xff] %v393_v41   ;;  %v265_v44 = vsel %vm249_vm7, %v241_v37, %v257_v42 }
  0x1e   : > { %v398_v45 = vpack.c.bf16 %v265_v44, %v264_v43 }
  0x20   : > { %402 = vst [vmem:[%s208_s28 + $0x18] sm:$0xff] %v398_v45  }
  0x21 PF: > { %s13_s14 = sadd.s32 1, %s451_s14   ;;  %s520_s12 = smov %s447_s13 }
  0x22   : > { %p10_p5 = scmp.ge.s32.totalorder %s13_s14, 4   ;;  %s521_s13 = smov %s523_s15 }
  0x24   :  { %12 = sbr.rel (!%p10_p5) target bundleno = 2 (0x2), region = 62 }

// kernel: modifier_forward.14
= control target key start
LH: loop header
LB: loop body
LE: loop exit
PB: predicated region body
PF: predicated region fallthrough
CT: control target
= control target key end

     0   :  { %s115_s0 = inlined_call_operand.vmem [shape: f32[1,32,128], index: 0, kind: input, shape index: {}]   ;;  %s116_s1 = inlined_call_operand.vmem [shape: f32[1,128], index: 1, kind: input, shape index: {}]   ;;  %s117_s2 = inlined_call_operand.vmem [shape: f32[1,128], index: 2, kind: input, shape index: {}]   ;;  %s118_s3 = inlined_call_operand.vmem [shape: bf16[1,32,128], index: 3, kind: output, shape index: {}]  }
   0x1   :  { %v14_v0 = vld [vmem:[%s115_s0] sm:$0xff]  ;;  %v15_v1 = vld [vmem:[%s115_s0 + $0x8] sm:$0xff]  ;;  %v16_v4 = vld [vmem:[%s115_s0 + $0x10] sm:$0xff] }
   0x2   :  { %v69_v2 = vld [vmem:[%s116_s1] ss:$0 sm:$0xff]  ;;  %v17_v5 = vld [vmem:[%s115_s0 + $0x18] sm:$0xff] }
   0x3   :  { %v70_v3 = vld [vmem:[%s117_s2] ss:$0 sm:$0xff]  ;;  %v22_v6 = vmul.f32 %v69_v2, %v14_v0  ;;  %v23_v7 = vmul.f32 %v69_v2, %v15_v1  ;;  %v24_v8 = vmul.f32 %v69_v2, %v16_v4  ;;  %v25_v9 = vmul.f32 %v69_v2, %v17_v5 }
   0x5   :  { %v30_v10 = vadd.f32 %v70_v3, %v22_v6  ;;  %v31_v11 = vadd.f32 %v70_v3, %v23_v7  ;;  %v32_v12 = vadd.f32 %v70_v3, %v24_v8  ;;  %v33_v13 = vadd.f32 %v70_v3, %v25_v9 }
   0x7   :  { %vm34_vm0 = vcmp.ge.f32.partialorder %v30_v10, 0.0  ;;  %vm35_vm1 = vcmp.ge.f32.partialorder %v31_v11, 0.0  ;;  %v38_v14 = vmul.f32 0.2, %v30_v10  ;;  %v39_v15 = vmul.f32 0.2, %v31_v11 }
   0x8   :  { %vm36_vm2 = vcmp.ge.f32.partialorder %v32_v12, 0.0  ;;  %vm37_vm3 = vcmp.ge.f32.partialorder %v33_v13, 0.0  ;;  %v40_v16 = vmul.f32 0.2, %v32_v12  ;;  %v41_v17 = vmul.f32 0.2, %v33_v13 }
   0x9   :  { %v42_v18 = vsel %vm34_vm0, %v30_v10, %v38_v14  ;;  %v43_v19 = vsel %vm35_vm1, %v31_v11, %v39_v15 }
   0xa   :  { %v61_v20 = vpack.c.bf16 %v43_v19, %v42_v18  ;;  %v44_v21 = vsel %vm36_vm2, %v32_v12, %v40_v16  ;;  %v45_v22 = vsel %vm37_vm3, %v33_v13, %v41_v17 }
   0xb   :  { %v66_v23 = vpack.c.bf16 %v45_v22, %v44_v21 }
   0xc   :  { %62 = vst [vmem:[%s118_s3] sm:$0xff] %v61_v20  }
   0xd   :  { %68 = vst [vmem:[%s118_s3 + $0x8] sm:$0xff] %v66_v23  }

// kernel: modifier_forward.13
= control target key start
LH: loop header
LB: loop body
LE: loop exit
PB: predicated region body
PF: predicated region fallthrough
CT: control target
= control target key end

     0   :  { %v138_v27 = vlaneseq  ;;  %s276_s1 = inlined_call_operand.vmem [shape: bf16[1,128,128], index: 1, kind: input, shape index: {}]   ;;  %s277_s0 = inlined_call_operand.vmem [shape: bf16[1,32,128], index: 0, kind: input, shape index: {}]   ;;  %s278_s2 = inlined_call_operand.vmem [shape: f32[1,32,128], index: 2, kind: output, shape index: {0}]   ;;  %s279_s3 = inlined_call_operand.vmem [shape: f32[1,8,128], index: 3, kind: output, shape index: {1}]  }
   0x1   :  { %v202_v0 = vld [vmem:[%s276_s1 + $0x38] sm:$0xff]  ;;  %v201_v1 = vld [vmem:[%s276_s1 + $0x30] sm:$0xff]  ;;  %v200_v2 = vld [vmem:[%s276_s1 + $0x28] sm:$0xff] }
   0x2   :  { %93 = vmatpush.bf16.msra.mxu0 %v202_v0  ;;  %203 = vmatpush.bf16.msra.mxu1 %v202_v0  ;;  %v199_v3 = vld [vmem:[%s276_s1 + $0x20] sm:$0xff]  ;;  %v198_v4 = vld [vmem:[%s276_s1 + $0x18] sm:$0xff]  ;;  %v197_v5 = vld [vmem:[%s276_s1 + $0x10] sm:$0xff]  ;;  %v139_v32 = vshrl.u32 %v138_v27, 7 }
   0x3   :  { %v196_v6 = vld [vmem:[%s276_s1 + $0x8] sm:$0xff]  ;;  %v195_v7 = vld [vmem:[%s276_s1] sm:$0xff] }
   0x4   :  { %v193_v8 = vld [vmem:[%s277_s0] sm:$0xff]  ;;  %v194_v9 = vld [vmem:[%s277_s0 + $0x8] sm:$0xff]  ;;  %vm141_vm0 = vcmp.eq.s32.totalorder %v139_v32, 1  ;;  %vm140_vm1 = vcmp.eq.s32.totalorder %v139_v32, 0 }
   0x6   :  { %94 = vmatpush.bf16.msra.mxu0 %v201_v1  ;;  %204 = vmatpush.bf16.msra.mxu1 %v201_v1 }
   0xa   :  { %95 = vmatpush.bf16.msra.mxu0 %v200_v2  ;;  %205 = vmatpush.bf16.msra.mxu1 %v200_v2 }
   0xe   :  { %96 = vmatpush.bf16.msra.mxu0 %v199_v3  ;;  %206 = vmatpush.bf16.msra.mxu1 %v199_v3 }
  0x12   :  { %97 = vmatpush.bf16.msra.mxu0 %v198_v4  ;;  %207 = vmatpush.bf16.msra.mxu1 %v198_v4 }
  0x16   :  { %98 = vmatpush.bf16.msra.mxu0 %v197_v5  ;;  %208 = vmatpush.bf16.msra.mxu1 %v197_v5 }
  0x1a   :  { %99 = vmatpush.bf16.msra.mxu0 %v196_v6  ;;  %209 = vmatpush.bf16.msra.mxu1 %v196_v6 }
  0x1e   :  { %100 = vmatpush.bf16.msra.mxu0 %v195_v7  ;;  %210 = vmatpush.bf16.msra.mxu1 %v195_v7 }
  0x21   :  { %101 = vmatmul.bf16.vlgmr.msra.gmra.mxu0 %v193_v8  ;;  %106 = vmatmul.bf16.vlgmr.msra.gmra.mxu1 %v194_v9 }
  0x9e   :  { %v102_v10 = vpop.f32.mrf.mxu0  ;;  %v107_v11 = vpop.f32.mrf.mxu1 }
  0x9f   :  { %112 = vst [vmem:[%s278_s2] sm:$0xff] %v102_v10  ;;  %v125_v14 = vmul.f32 %v102_v10, %v102_v10  ;;  %v127_v17 = vmul.f32 %v107_v11, %v107_v11 }
  0xa0   :  { %114 = vst [vmem:[%s278_s2 + $0x10] sm:$0xff] %v107_v11 }
  0xa6   :  { %v104_v12 = vpop.f32.mrf.mxu0  ;;  %v109_v13 = vpop.f32.mrf.mxu1 }
  0xa7   :  { %113 = vst [vmem:[%s278_s2 + $0x8] sm:$0xff] %v104_v12  ;;  %v116_v15 = vadd.f32 %v104_v12, %v102_v10  ;;  %v126_v16 = vmul.f32 %v104_v12, %v104_v12  ;;  %v128_v21 = vmul.f32 %v109_v13, %v109_v13 }
  0xa8   :  { %115 = vst [vmem:[%s278_s2 + $0x18] sm:$0xff] %v109_v13 }
  0xa9   :  { %v129_v18 = vadd.f32 %v126_v16, %v125_v14  ;;  %v117_v19 = vadd.f32 %v116_v15, %v107_v11 }
  0xab   :  { %v118_v20 = vadd.f32 %v117_v19, %v109_v13  ;;  %v130_v22 = vadd.f32 %v129_v18, %v127_v17 }
  0xad   :  { %v119_v23 = vrot.slane %v118_v20, 4  ;;  %v131_v24 = vadd.f32 %v130_v22, %v128_v21 }
  0xaf   :  { %v120_v25 = vadd.f32 %v119_v23, %v118_v20  ;;  %v132_v26 = vrot.slane %v131_v24, 4 }
  0xb1   :  { %v121_v28 = vrot.slane %v120_v25, 2  ;;  %v133_v29 = vadd.f32 %v132_v26, %v131_v24 }
  0xb3   :  { %v122_v30 = vadd.f32 %v121_v28, %v120_v25  ;;  %v134_v31 = vrot.slane %v133_v29, 2 }
  0xb5   :  { %v135_v33 = vadd.f32 %v134_v31, %v133_v29  ;;  %v123_v34 = vrot.slane %v122_v30, 1 }
  0xb7   :  { %v136_v35 = vrot.slane %v135_v33, 1  ;;  %v124_v37 = vadd.f32 %v123_v34, %v122_v30 }
  0xb9   :  { %v137_v36 = vadd.f32 %v136_v35, %v135_v33 }
  0xbb   :  { %v142_v38 = vsel %vm141_vm0, %v137_v36, 0.0 }
  0xbc   :  { %v143_v39 = vsel %vm140_vm1, %v124_v37, %v142_v38 }
  0xbd   :  { %144 = vst [vmem:[%s279_s3] sm:$0xff] %v143_v39 }

// kernel: modifier_forward.16
= control target key start
LH: loop header
LB: loop body
LE: loop exit
PB: predicated region body
PF: predicated region fallthrough
CT: control target
= control target key end

     0   :  { %s68_s0 = inlined_call_operand.vmem [shape: f32[1,8,128], index: 0, kind: input, shape index: {}]   ;;  %s69_s1 = inlined_call_operand.vmem [shape: f32[1,128], index: 1, kind: input, shape index: {}]   ;;  %s70_s2 = inlined_call_operand.vmem [shape: f32[1,128], index: 2, kind: input, shape index: {}]   ;;  %s71_s3 = inlined_call_operand.vmem [shape: bf16[1,8,128], index: 3, kind: output, shape index: {}]  }
   0x1   :  { %v14_v0 = vld [vmem:[%s68_s0] sm:$0xff] }
   0x2   :  { %v34_v1 = vld [vmem:[%s69_s1] ss:$0 sm:$0xff] }
   0x3   :  { %v35_v2 = vld [vmem:[%s70_s2] ss:$0 sm:$0xff]  ;;  %v19_v3 = vmul.f32 %v34_v1, %v14_v0 }
   0x5   :  { %v24_v4 = vadd.f32 %v35_v2, %v19_v3 }
   0x7   :  { %vm25_vm0 = vcmp.ge.f32.partialorder %v24_v4, 0.0  ;;  %v26_v5 = vmul.f32 0.2, %v24_v4 }
   0x9   :  { %v27_v6 = vsel %vm25_vm0, %v24_v4, %v26_v5 }
   0xa   :  { %v28_v7 = vpack.c.bf16 %v27_v6, %v27_v6 }
   0xc   :  { %29 = vst [vmem:[%s71_s3] sm:$0xf] %v28_v7 }

// kernel: modifier_forward.15
= control target key start
LH: loop header
LB: loop body
LE: loop exit
PB: predicated region body
PF: predicated region fallthrough
CT: control target
= control target key end

     0   :  { %v189_v28 = vlaneseq  ;;  %s361_s1 = inlined_call_operand.vmem [shape: bf16[1,256,128], index: 1, kind: input, shape index: {}]   ;;  %s362_s0 = inlined_call_operand.vmem [shape: bf16[1,8,256], index: 0, kind: input, shape index: {}]   ;;  %s363_s2 = inlined_call_operand.vmem [shape: f32[1,8,128], index: 2, kind: output, shape index: {0}]   ;;  %s364_s3 = inlined_call_operand.vmem [shape: f32[1,8,128], index: 3, kind: output, shape index: {1}]  }
   0x1   :  { %v275_v0 = vld [vmem:[%s361_s1 + $0x38] sm:$0xff]  ;;  %v274_v2 = vld [vmem:[%s361_s1 + $0x30] sm:$0xff]  ;;  %v273_v4 = vld [vmem:[%s361_s1 + $0x28] sm:$0xff] }
   0x2   :  { %v283_v1 = vld [vmem:[%s361_s1 + $0x78] sm:$0xff]  ;;  %149 = vmatpush.bf16.msra.mxu0 %v275_v0  ;;  %v282_v3 = vld [vmem:[%s361_s1 + $0x70] sm:$0xff]  ;;  %v281_v5 = vld [vmem:[%s361_s1 + $0x68] sm:$0xff]  ;;  %v190_v35 = vshrl.u32 %v189_v28, 7 }
   0x3   :  { %162 = vmatpush.bf16.msra.mxu1 %v283_v1  ;;  %v272_v6 = vld [vmem:[%s361_s1 + $0x20] sm:$0xff]  ;;  %v271_v8 = vld [vmem:[%s361_s1 + $0x18] sm:$0xff]  ;;  %v270_v10 = vld [vmem:[%s361_s1 + $0x10] sm:$0xff] }
   0x4   :  { %v280_v7 = vld [vmem:[%s361_s1 + $0x60] sm:$0xff]  ;;  %v279_v9 = vld [vmem:[%s361_s1 + $0x58] sm:$0xff]  ;;  %v278_v11 = vld [vmem:[%s361_s1 + $0x50] sm:$0xff]  ;;  %vm192_vm0 = vcmp.eq.s32.totalorder %v190_v35, 1  ;;  %vm191_vm1 = vcmp.eq.s32.totalorder %v190_v35, 0 }
   0x5   :  { %v269_v12 = vld [vmem:[%s361_s1 + $0x8] sm:$0xff]  ;;  %v13_v14 = vld [vmem:[%s362_s0] sm:$0xff] }
   0x6   :  { %150 = vmatpush.bf16.msra.mxu0 %v274_v2  ;;  %v277_v13 = vld [vmem:[%s361_s1 + $0x48] sm:$0xff]  ;;  %v47_v15 = vunpack.c.l.b16 %v13_v14  ;;  %v48_v16 = vunpack.c.h.b16 %v13_v14  ;;  %v268_v17 = vld [vmem:[%s361_s1] sm:$0xff] }
   0x7   :  { %163 = vmatpush.bf16.msra.mxu1 %v282_v3  ;;  %v276_v18 = vld [vmem:[%s361_s1 + $0x40] sm:$0xff] }
   0x8   :  { %v49_v19 = vpack.c.b16 %v47_v15, %v47_v15  ;;  %v50_v20 = vpack.c.b16 %v48_v16, %v48_v16 }
   0xa   :  { %151 = vmatpush.bf16.msra.mxu0 %v273_v4 }
   0xb   :  { %164 = vmatpush.bf16.msra.mxu1 %v281_v5 }
   0xe   :  { %152 = vmatpush.bf16.msra.mxu0 %v272_v6 }
   0xf   :  { %165 = vmatpush.bf16.msra.mxu1 %v280_v7 }
  0x12   :  { %153 = vmatpush.bf16.msra.mxu0 %v271_v8 }
  0x13   :  { %166 = vmatpush.bf16.msra.mxu1 %v279_v9 }
  0x16   :  { %154 = vmatpush.bf16.msra.mxu0 %v270_v10 }
  0x17   :  { %167 = vmatpush.bf16.msra.mxu1 %v278_v11 }
  0x1a   :  { %155 = vmatpush.bf16.msra.mxu0 %v269_v12 }
  0x1b   :  { %168 = vmatpush.bf16.msra.mxu1 %v277_v13 }
  0x1e   :  { %156 = vmatpush.bf16.msra.mxu0 %v268_v17 }
  0x1f   :  { %169 = vmatpush.bf16.msra.mxu1 %v276_v18 }
  0x21   :  { %157 = vmatmul.bf16.vlgmr.msra.gmra.mxu0 %v49_v19 }
  0x22   :  { %170 = vmatmul.bf16.vlgmr.msra.gmra.mxu1 %v50_v20 }
  0x9e   :  { %v158_v21 = vpop.f32.mrf.mxu0 }
  0x9f   :  { %v171_v22 = vpop.f32.mrf.mxu1 }
  0xa0   :  { %v172_v23 = vadd.f32 %v171_v22, %v158_v21 }
  0xa2   :  { %175 = vst [vmem:[%s363_s2] sm:$0xff] %v172_v23  ;;  %v176_v24 = vrot.slane %v172_v23, 4  ;;  %v182_v25 = vmul.f32 %v172_v23, %v172_v23 }
  0xa4   :  { %v177_v26 = vadd.f32 %v176_v24, %v172_v23  ;;  %v183_v27 = vrot.slane %v182_v25, 4 }
  0xa6   :  { %v178_v29 = vrot.slane %v177_v26, 2  ;;  %v184_v30 = vadd.f32 %v183_v27, %v182_v25  ;;  %v160_v31 = vpop.f32.mrf.mxu0 }
  0xa7   :  { %v173_v32 = vpop.f32.mrf.mxu1 }
  0xa8   :  { %v179_v33 = vadd.f32 %v178_v29, %v177_v26  ;;  %v185_v34 = vrot.slane %v184_v30, 2 }
  0xaa   :  { %v186_v36 = vadd.f32 %v185_v34, %v184_v30  ;;  %v180_v37 = vrot.slane %v179_v33, 1 }
  0xac   :  { %v187_v38 = vrot.slane %v186_v36, 1  ;;  %v181_v40 = vadd.f32 %v180_v37, %v179_v33 }
  0xae   :  { %v188_v39 = vadd.f32 %v187_v38, %v186_v36 }
  0xb0   :  { %v193_v41 = vsel %vm192_vm0, %v188_v39, 0.0 }
  0xb1   :  { %v194_v42 = vsel %vm191_vm1, %v181_v40, %v193_v41 }
  0xb2   :  { %195 = vst [vmem:[%s364_s3] sm:$0xff] %v194_v42 }

// kernel: modifier_forward.17
= control target key start
LH: loop header
LB: loop body
LE: loop exit
PB: predicated region body
PF: predicated region fallthrough
CT: control target
= control target key end

     0   :  { %s634_s12 = smov 0   ;;  %s636_s13 = smov 0   ;;  %s678_s0 = inlined_call_operand.vmem [shape: bf16[4,8,144], index: 0, kind: input, shape index: {}]   ;;  %s679_s1 = inlined_call_operand.vmem [shape: bf16[4,144,128], index: 1, kind: input, shape index: {}]   ;;  %s680_s2 = inlined_call_operand.vmem [shape: f32[4,8,128], index: 2, kind: output, shape index: {0}]   ;;  %s681_s3 = inlined_call_operand.vmem [shape: f32[4,8,128], index: 3, kind: output, shape index: {1}]  }
   0x1   :  { %s638_s14 = smov 0  }
   0x2 LB: > { %s26_s15 = sadd.s32 1, %s608_s13  ;;  %p510_p0 = scmp.ge.s32.totalorder %s612_s14, 1  ;;  %s612_s14 = sphi %s638_s14, %s14_s14   ;;  %s608_s13 = sphi %s636_s13, %s683_s13   ;;  %s604_s12 = sphi %s634_s12, %s682_s12  }
   0x3   : > { %p28_p1 = scmp.ge.s32.totalorder %s26_s15, 4  ;;  %p172_p2 = scmp.lt.s32.totalorder %s612_s14, 5 }
   0x5   : > { %s685_s15 = smov (%p28_p1, %s26_s15), 0  ;;  %p173_p3 = pnand %p510_p0, %p172_p2 }
   0x6   : > { %p214_p4 = scmp.lt.s32.totalorder (!%p173_p3), %s604_s12, 3 }
   0x7   : > { %176 = sbr.rel (%p173_p3) target bundleno = 193 (0xc1), region = 28 }
   0xc   : > { %s687_s12 = smov (!%p214_p4, %s604_s12), 3  ;;  %vm322_vm0 = vcmask 130048   ;;  %v366_v22 = vlaneseq }
   0xd   : > { %s565_s16 = smul.u32 72, %s687_s12  ;;  %s652_s17 = sshll.u32 %s687_s12, 3 }
   0xe   : > { %s222_s20 = scalar_lea.vmem %s678_s0, %s652_s17  ;;  %s234_s26 = scalar_lea.vmem %s680_s2, %s652_s17  ;;  %v367_v28 = vshrl.u32 %v366_v22, 7 }
   0xf   : > { %s227_s23 = scalar_lea.vmem %s679_s1, %s565_s16  ;;  %v243_v0 = vld [vmem:[%s222_s20] sm:$0xff]  ;;  %s241_s29 = scalar_lea.vmem %s681_s3, %s652_s17 }
  0x10   : > { %v563_v1 = vld [vmem:[%s227_s23 + $0x38] sm:$0xff]  ;;  %v264_v2 = vunpack.c.h.b16 %v243_v0  ;;  %v562_v3 = vld [vmem:[%s227_s23 + $0x30] sm:$0xff]  ;;  %v564_v4 = vld [vmem:[%s227_s23 + $0x40] sm:$0xff]  ;;  %v263_v11 = vunpack.c.l.b16 %v243_v0  ;;  %vm369_vm1 = vcmp.eq.s32.totalorder %v367_v28, 1  ;;  %vm368_vm2 = vcmp.eq.s32.totalorder %v367_v28, 0 }
  0x11   : > { %326 = vmatpush.bf16.msra.mxu0 %v563_v1  ;;  %346 = vmatpush.bf16.msra.mxu1 %v564_v4  ;;  %v561_v6 = vld [vmem:[%s227_s23 + $0x28] sm:$0xff]  ;;  %v560_v7 = vld [vmem:[%s227_s23 + $0x20] sm:$0xff]  ;;  %v559_v8 = vld [vmem:[%s227_s23 + $0x18] sm:$0xff] }
  0x12   : > { %v266_v5 = vpack.c.b16 %v264_v2, %v264_v2  ;;  %v558_v9 = vld [vmem:[%s227_s23 + $0x10] sm:$0xff]  ;;  %v557_v10 = vld [vmem:[%s227_s23 + $0x8] sm:$0xff]  ;;  %v556_v12 = vld [vmem:[%s227_s23] sm:$0xff]  ;;  %v265_v13 = vpack.c.b16 %v263_v11, %v263_v11 }
  0x14   : > { %552 = vmatmul.msk.bf16.vlgmr.msra.gmra.mxu1 %vm322_vm0, %v266_v5 }
  0x15   : > { %327 = vmatpush.bf16.msra.mxu0 %v562_v3 }
  0x19   : > { %328 = vmatpush.bf16.msra.mxu0 %v561_v6 }
  0x1d   : > { %329 = vmatpush.bf16.msra.mxu0 %v560_v7 }
  0x21   : > { %330 = vmatpush.bf16.msra.mxu0 %v559_v8 }
  0x25   : > { %331 = vmatpush.bf16.msra.mxu0 %v558_v9 }
  0x29   : > { %332 = vmatpush.bf16.msra.mxu0 %v557_v10 }
  0x2d   : > { %333 = vmatpush.bf16.msra.mxu0 %v556_v12 }
  0x30   : > { %334 = vmatmul.bf16.vlgmr.msra.gmra.mxu0 %v265_v13 }
  0x91   : > { %v348_v14 = vpop.f32.mrf.mxu1 }
  0x99   : > { %v350_v15 = vpop.f32.mrf.mxu1 }
  0xad   : > { %v335_v16 = vpop.f32.mrf.mxu0 }
  0xae   : > { %v349_v17 = vadd.f32 %v348_v14, %v335_v16 }
  0xb0   : > { %352 = vst [vmem:[%s234_s26] sm:$0xff] %v349_v17  ;;  %v353_v18 = vrot.slane %v349_v17, 4  ;;  %v359_v19 = vmul.f32 %v349_v17, %v349_v17 }
  0xb2   : > { %v354_v20 = vadd.f32 %v353_v18, %v349_v17  ;;  %v360_v21 = vrot.slane %v359_v19, 4 }
  0xb4   : > { %v355_v23 = vrot.slane %v354_v20, 2  ;;  %v361_v24 = vadd.f32 %v360_v21, %v359_v19 }
  0xb5   : > { %v337_v25 = vpop.f32.mrf.mxu0 }
  0xb6   : > { %v356_v26 = vadd.f32 %v355_v23, %v354_v20  ;;  %v362_v27 = vrot.slane %v361_v24, 2 }
  0xb8   : > { %v363_v29 = vadd.f32 %v362_v27, %v361_v24  ;;  %v357_v30 = vrot.slane %v356_v26, 1 }
  0xba   : > { %v364_v31 = vrot.slane %v363_v29, 1  ;;  %v358_v33 = vadd.f32 %v357_v30, %v356_v26 }
  0xbc   : > { %v365_v32 = vadd.f32 %v364_v31, %v363_v29 }
  0xbe   : > { %v370_v34 = vsel %vm369_vm1, %v365_v32, 0.0 }
  0xbf   : > { %v371_v35 = vsel %vm368_vm2, %v358_v33, %v370_v34 }
  0xc0   : > { %372 = vst [vmem:[%s241_s29] sm:$0xff] %v371_v35 }
  0xc1 PF: > { %s14_s14 = sadd.s32 1, %s612_s14   ;;  %s682_s12 = smov %s608_s13 }
  0xc2   : > { %p11_p5 = scmp.ge.s32.totalorder %s14_s14, 6   ;;  %s683_s13 = smov %s685_s15 }
  0xc4   :  { %13 = sbr.rel (!%p11_p5) target bundleno = 2 (0x2), region = 73 }

// kernel: modifier_forward.18
= control target key start
LH: loop header
LB: loop body
LE: loop exit
PB: predicated region body
PF: predicated region fallthrough
CT: control target
= control target key end

     0   :  { %s364_s12 = smov 0   ;;  %s366_s13 = smov 0   ;;  %s391_s0 = inlined_call_operand.vmem [shape: f32[4,8,128], index: 0, kind: input, shape index: {}]   ;;  %s392_s1 = inlined_call_operand.vmem [shape: f32[1,128], index: 1, kind: input, shape index: {}]   ;;  %s393_s2 = inlined_call_operand.vmem [shape: f32[1,128], index: 2, kind: input, shape index: {}]   ;;  %s394_s3 = inlined_call_operand.vmem [shape: bf16[4,8,128], index: 3, kind: output, shape index: {}]  }
   0x1   :  { %s368_s14 = smov 0  }
   0x2 LB: > { %s25_s15 = sadd.s32 1, %s338_s13  ;;  %p289_p0 = scmp.ge.s32.totalorder %s342_s14, 1  ;;  %s342_s14 = sphi %s368_s14, %s13_s14   ;;  %s338_s13 = sphi %s366_s13, %s396_s13   ;;  %s334_s12 = sphi %s364_s12, %s395_s12  }
   0x3   : > { %p27_p1 = scmp.ge.s32.totalorder %s25_s15, 4  ;;  %p155_p2 = scmp.lt.s32.totalorder %s342_s14, 5 }
   0x5   : > { %s398_s15 = smov (%p27_p1, %s25_s15), 0  ;;  %p156_p3 = pnand %p289_p0, %p155_p2 }
   0x6   : > { %p183_p4 = scmp.lt.s32.totalorder (!%p156_p3), %s334_s12, 3 }
   0x7   : > { %159 = sbr.rel (%p156_p3) target bundleno = 25 (0x19), region = 32 }
   0xc   : > { %s400_s12 = smov (!%p183_p4, %s334_s12), 3  ;;  %v318_v0 = vld [vmem:[%s392_s1] ss:$0 sm:$0xff] }
   0xd   : > { %s290_s18 = sshll.u32 %s400_s12, 3  ;;  %v319_v1 = vld [vmem:[%s393_s2] ss:$0 sm:$0xff]  ;;  %s291_s24 = sshll.u32 %s400_s12, 2 }
   0xe   : > { %s189_s21 = scalar_lea.vmem %s391_s0, %s290_s18  ;;  %s196_s27 = scalar_lea.vmem %s394_s3, %s291_s24 }
   0xf   : > { %v197_v2 = vld [vmem:[%s189_s21] sm:$0xff] }
  0x10   : > { %v202_v3 = vmul.f32 %v318_v0, %v197_v2 }
  0x12   : > { %v207_v4 = vadd.f32 %v319_v1, %v202_v3 }
  0x14   : > { %v208_v5 = vmax.f32 %v207_v4, 0.0 }
  0x16   : > { %v209_v6 = vpack.c.bf16 %v208_v5, %v208_v5 }
  0x18   : > { %210 = vst [vmem:[%s196_s27] sm:$0xf] %v209_v6 }
  0x19 PF: > { %s13_s14 = sadd.s32 1, %s342_s14   ;;  %s395_s12 = smov %s338_s13 }
  0x1a   : > { %p10_p5 = scmp.ge.s32.totalorder %s13_s14, 6   ;;  %s396_s13 = smov %s398_s15 }
  0x1c   :  { %12 = sbr.rel (!%p10_p5) target bundleno = 2 (0x2), region = 62 }

// kernel: modifier_forward.19
= control target key start
LH: loop header
LB: loop body
LE: loop exit
PB: predicated region body
PF: predicated region fallthrough
CT: control target
= control target key end

     0   :  { %s766_s12 = smov 0   ;;  %s768_s13 = smov 0   ;;  %s830_s0 = inlined_call_operand.vmem [shape: bf16[4,32,192], index: 0, kind: input, shape index: {}]   ;;  %s831_s1 = inlined_call_operand.vmem [shape: bf16[4,192,128], index: 1, kind: input, shape index: {}]   ;;  %s832_s2 = inlined_call_operand.vmem [shape: f32[4,32,128], index: 2, kind: output, shape index: {0}]   ;;  %s833_s3 = inlined_call_operand.vmem [shape: f32[4,8,128], index: 3, kind: output, shape index: {1}]  }
   0x1   :  { %s770_s14 = smov 0  }
   0x2 LB: > { %s26_s15 = sadd.s32 1, %s740_s13  ;;  %p596_p0 = scmp.ge.s32.totalorder %s744_s14, 1  ;;  %s744_s14 = sphi %s770_s14, %s14_s14   ;;  %s740_s13 = sphi %s768_s13, %s835_s13   ;;  %s736_s12 = sphi %s766_s12, %s834_s12  }
   0x3   : > { %p28_p1 = scmp.ge.s32.totalorder %s26_s15, 4  ;;  %p174_p2 = scmp.lt.s32.totalorder %s744_s14, 5 }
   0x5   : > { %s837_s15 = smov (%p28_p1, %s26_s15), 0  ;;  %p175_p3 = pnand %p596_p0, %p174_p2 }
   0x6   : > { %p220_p4 = scmp.lt.s32.totalorder (!%p175_p3), %s736_s12, 3 }
   0x7   : > { %178 = sbr.rel (%p175_p3) target bundleno = 210 (0xd2), region = 28 }
   0xc   : > { %s839_s12 = smov (!%p220_p4, %s736_s12), 3  ;;  %vm371_vm0 = vcmask 523264   ;;  %v442_v49 = vlaneseq }
   0xd   : > { %s697_s16 = smul.u32 96, %s839_s12  ;;  %s671_s20 = sshll.u32 %s839_s12, 5 }
   0xe   : > { %s228_s23 = scalar_lea.vmem %s830_s0, %s671_s20  ;;  %s243_s26 = scalar_lea.vmem %s832_s2, %s671_s20  ;;  %v443_v54 = vshrl.u32 %v442_v49, 7 }
   0xf   : > { %s790_s19 = scalar_lea.vmem %s831_s1, %s697_s16  ;;  %v673_v8 = vld [vmem:[%s228_s23 + $0x4] sm:$0xf]  ;;  %v607_v9 = vld [vmem:[%s228_s23 + $0x8] sm:$0xf0]  ;;  %v605_v14 = vld [vmem:[%s228_s23] sm:$0xf] }
  0x10   : > { %v684_v0 = vld [vmem:[%s790_s19 + $0x38] sm:$0xff]  ;;  %v683_v2 = vld [vmem:[%s790_s19 + $0x30] sm:$0xff]  ;;  %v682_v4 = vld [vmem:[%s790_s19 + $0x28] sm:$0xff]  ;;  %v610_v10 = vor.u32 %v673_v8, %v607_v9  ;;  %s602_s27 = sshll.u32 %s839_s12, 3  ;;  %vm445_vm1 = vcmp.eq.s32.totalorder %v443_v54, 1  ;;  %vm444_vm2 = vcmp.eq.s32.totalorder %v443_v54, 0 }
  0x11   : > { %v688_v1 = vld [vmem:[%s790_s19 + $0x58] sm:$0xff]  ;;  %378 = vmatpush.bf16.msra.mxu0 %v684_v0  ;;  %689 = vmatpush.bf16.msra.mxu2 %v684_v0  ;;  %v687_v3 = vld [vmem:[%s790_s19 + $0x50] sm:$0xff]  ;;  %v686_v5 = vld [vmem:[%s790_s19 + $0x48] sm:$0xff]  ;;  %s251_s30 = scalar_lea.vmem %s833_s3, %s602_s27 }
  0x12   : > { %401 = vmatpush.bf16.msra.mxu1 %v688_v1  ;;  %v681_v6 = vld [vmem:[%s790_s19 + $0x20] sm:$0xff]  ;;  %v680_v11 = vld [vmem:[%s790_s19 + $0x18] sm:$0xff]  ;;  %v679_v12 = vld [vmem:[%s790_s19 + $0x10] sm:$0xff] }
  0x13   : > { %v685_v7 = vld [vmem:[%s790_s19 + $0x40] sm:$0xff]  ;;  %v678_v13 = vld [vmem:[%s790_s19 + $0x8] sm:$0xff]  ;;  %v613_v17 = vld [vmem:[%s228_s23 + $0x10] sm:$0xf] }
  0x14   : > { %v677_v15 = vld [vmem:[%s790_s19] sm:$0xff]  ;;  %v674_v16 = vld [vmem:[%s228_s23 + $0x4] sm:$0xf0]  ;;  %v676_v18 = vld [vmem:[%s228_s23 + $0x14] sm:$0xf0] }
  0x15   : > { %379 = vmatpush.bf16.msra.mxu0 %v683_v2  ;;  %690 = vmatpush.bf16.msra.mxu2 %v683_v2  ;;  %v675_v19 = vld [vmem:[%s228_s23 + $0x14] sm:$0xf]  ;;  %v615_v20 = vld [vmem:[%s228_s23 + $0x18] sm:$0xf0]  ;;  %v606_v21 = vor.u32 %v674_v16, %v605_v14  ;;  %v614_v22 = vor.u32 %v676_v18, %v613_v17 }
  0x16   : > { %402 = vmatpush.bf16.msra.mxu1 %v687_v3  ;;  %v618_v23 = vor.u32 %v675_v19, %v615_v20 }
  0x19   : > { %380 = vmatpush.bf16.msra.mxu0 %v682_v4  ;;  %691 = vmatpush.bf16.msra.mxu2 %v682_v4 }
  0x1a   : > { %403 = vmatpush.bf16.msra.mxu1 %v686_v5 }
  0x1d   : > { %381 = vmatpush.bf16.msra.mxu0 %v681_v6  ;;  %692 = vmatpush.bf16.msra.mxu2 %v681_v6 }
  0x1e   : > { %404 = vmatpush.bf16.msra.mxu1 %v685_v7 }
  0x21   : > { %667 = vmatmul.msk.bf16.vlgmr.msra.gmra.mxu1 %vm371_vm0, %v610_v10  ;;  %382 = vmatpush.bf16.msra.mxu0 %v680_v11 }
  0x22   : > { %693 = vmatpush.bf16.msra.mxu2 %v680_v11 }
  0x25   : > { %383 = vmatpush.bf16.msra.mxu0 %v679_v12 }
  0x26   : > { %694 = vmatpush.bf16.msra.mxu2 %v679_v12 }
  0x29   : > { %384 = vmatpush.bf16.msra.mxu0 %v678_v13 }
  0x2a   : > { %695 = vmatpush.bf16.msra.mxu2 %v678_v13 }
  0x2d   : > { %385 = vmatpush.bf16.msra.mxu0 %v677_v15 }
  0x2e   : > { %696 = vmatpush.bf16.msra.mxu2 %v677_v15 }
  0x30   : > { %386 = vmatmul.bf16.vlgmr.msra.gmra.mxu0 %v606_v21 }
  0x31   : > { %391 = vmatmul.bf16.vlgmr.msra.gmra.mxu2 %v614_v22  ;;  %668 = vmatmul.msk.bf16.gmra.mxu1 %vm371_vm0, %v618_v23 }
  0x9e   : > { %v406_v24 = vpop.f32.mrf.mxu1 }
  0xa6   : > { %v408_v25 = vpop.f32.mrf.mxu1 }
  0xad   : > { %v387_v26 = vpop.f32.mrf.mxu0 }
  0xae   : > { %v407_v27 = vadd.f32 %v406_v24, %v387_v26  ;;  %v411_v28 = vpop.f32.mrf.mxu1 }
  0xb0   : > { %416 = vst [vmem:[%s243_s26] sm:$0xff] %v407_v27  ;;  %v429_v34 = vmul.f32 %v407_v27, %v407_v27 }
  0xb4   : > { %v392_v29 = vpop.f32.mrf.mxu2 }
  0xb5   : > { %v412_v30 = vadd.f32 %v411_v28, %v392_v29  ;;  %v389_v31 = vpop.f32.mrf.mxu0 }
  0xb6   : > { %v409_v32 = vadd.f32 %v408_v25, %v389_v31  ;;  %v413_v37 = vpop.f32.mrf.mxu1 }
  0xb7   : > { %418 = vst [vmem:[%s243_s26 + $0x10] sm:$0xff] %v412_v30  ;;  %v431_v39 = vmul.f32 %v412_v30, %v412_v30 }
  0xb8   : > { %417 = vst [vmem:[%s243_s26 + $0x8] sm:$0xff] %v409_v32  ;;  %v430_v33 = vmul.f32 %v409_v32, %v409_v32  ;;  %v420_v35 = vadd.f32 %v409_v32, %v407_v27 }
  0xba   : > { %v433_v36 = vadd.f32 %v430_v33, %v429_v34  ;;  %v421_v41 = vadd.f32 %v420_v35, %v412_v30 }
  0xbc   : > { %v394_v38 = vpop.f32.mrf.mxu2  ;;  %v434_v44 = vadd.f32 %v433_v36, %v431_v39 }
  0xbd   : > { %v414_v40 = vadd.f32 %v413_v37, %v394_v38 }
  0xbf   : > { %419 = vst [vmem:[%s243_s26 + $0x18] sm:$0xff] %v414_v40  ;;  %v422_v42 = vadd.f32 %v421_v41, %v414_v40  ;;  %v432_v43 = vmul.f32 %v414_v40, %v414_v40 }
  0xc1   : > { %v423_v45 = vrot.slane %v422_v42, 4  ;;  %v435_v46 = vadd.f32 %v434_v44, %v432_v43 }
  0xc3   : > { %v424_v47 = vadd.f32 %v423_v45, %v422_v42  ;;  %v436_v48 = vrot.slane %v435_v46, 4 }
  0xc5   : > { %v425_v50 = vrot.slane %v424_v47, 2  ;;  %v437_v51 = vadd.f32 %v436_v48, %v435_v46 }
  0xc7   : > { %v426_v52 = vadd.f32 %v425_v50, %v424_v47  ;;  %v438_v53 = vrot.slane %v437_v51, 2 }
  0xc9   : > { %v439_v55 = vadd.f32 %v438_v53, %v437_v51  ;;  %v427_v56 = vrot.slane %v426_v52, 1 }
  0xcb   : > { %v440_v57 = vrot.slane %v439_v55, 1  ;;  %v428_v59 = vadd.f32 %v427_v56, %v426_v52 }
  0xcd   : > { %v441_v58 = vadd.f32 %v440_v57, %v439_v55 }
  0xcf   : > { %v446_v60 = vsel %vm445_vm1, %v441_v58, 0.0 }
  0xd0   : > { %v447_v61 = vsel %vm444_vm2, %v428_v59, %v446_v60 }
  0xd1   : > { %448 = vst [vmem:[%s251_s30] sm:$0xff] %v447_v61 }
  0xd2 PF: > { %s14_s14 = sadd.s32 1, %s744_s14   ;;  %s834_s12 = smov %s740_s13 }
  0xd3   : > { %p11_p5 = scmp.ge.s32.totalorder %s14_s14, 6   ;;  %s835_s13 = smov %s837_s15 }
  0xd5   :  { %13 = sbr.rel (!%p11_p5) target bundleno = 2 (0x2), region = 73 }

// kernel: modifier_forward.20
= control target key start
LH: loop header
LB: loop body
LE: loop exit
PB: predicated region body
PF: predicated region fallthrough
CT: control target
= control target key end

     0   :  { %s423_s12 = smov 0   ;;  %s425_s13 = smov 0   ;;  %s462_s0 = inlined_call_operand.vmem [shape: f32[4,32,128], index: 0, kind: input, shape index: {}]   ;;  %s463_s1 = inlined_call_operand.vmem [shape: f32[1,128], index: 1, kind: input, shape index: {}]   ;;  %s464_s2 = inlined_call_operand.vmem [shape: f32[1,128], index: 2, kind: input, shape index: {}]   ;;  %s465_s3 = inlined_call_operand.vmem [shape: bf16[4,32,128], index: 3, kind: output, shape index: {}]  }
   0x1   :  { %s427_s14 = smov 0  }
   0x2 LB: > { %s25_s15 = sadd.s32 1, %s397_s13  ;;  %p333_p0 = scmp.ge.s32.totalorder %s401_s14, 1  ;;  %s401_s14 = sphi %s427_s14, %s13_s14   ;;  %s397_s13 = sphi %s425_s13, %s467_s13   ;;  %s393_s12 = sphi %s423_s12, %s466_s12  }
   0x3   : > { %p27_p1 = scmp.ge.s32.totalorder %s25_s15, 4  ;;  %p158_p2 = scmp.lt.s32.totalorder %s401_s14, 5 }
   0x5   : > { %s469_s15 = smov (%p27_p1, %s25_s15), 0  ;;  %p159_p3 = pnand %p333_p0, %p158_p2 }
   0x6   : > { %p191_p4 = scmp.lt.s32.totalorder (!%p159_p3), %s393_s12, 3 }
   0x7   : > { %162 = sbr.rel (%p159_p3) target bundleno = 26 (0x1a), region = 32 }
   0xc   : > { %s471_s12 = smov (!%p191_p4, %s393_s12), 3  ;;  %v377_v0 = vld [vmem:[%s463_s1] ss:$0 sm:$0xff] }
   0xd   : > { %s340_s18 = sshll.u32 %s471_s12, 5  ;;  %v378_v1 = vld [vmem:[%s464_s2] ss:$0 sm:$0xff]  ;;  %s341_s24 = sshll.u32 %s471_s12, 4 }
   0xe   : > { %s198_s21 = scalar_lea.vmem %s462_s0, %s340_s18  ;;  %s208_s27 = scalar_lea.vmem %s465_s3, %s341_s24 }
   0xf   : > { %v210_v2 = vld [vmem:[%s198_s21] sm:$0xff]  ;;  %v211_v3 = vld [vmem:[%s198_s21 + $0x8] sm:$0xff]  ;;  %v212_v4 = vld [vmem:[%s198_s21 + $0x10] sm:$0xff] }
  0x10   : > { %v218_v5 = vmul.f32 %v377_v0, %v210_v2  ;;  %v219_v6 = vmul.f32 %v377_v0, %v211_v3  ;;  %v213_v7 = vld [vmem:[%s198_s21 + $0x18] sm:$0xff]  ;;  %v220_v8 = vmul.f32 %v377_v0, %v212_v4 }
  0x11   : > { %v221_v9 = vmul.f32 %v377_v0, %v213_v7 }
  0x12   : > { %v226_v10 = vadd.f32 %v378_v1, %v218_v5  ;;  %v227_v11 = vadd.f32 %v378_v1, %v219_v6  ;;  %v228_v12 = vadd.f32 %v378_v1, %v220_v8 }
  0x13   : > { %v229_v13 = vadd.f32 %v378_v1, %v221_v9 }
  0x14   : > { %v230_v14 = vmax.f32 %v226_v10, 0.0  ;;  %v231_v15 = vmax.f32 %v227_v11, 0.0  ;;  %v232_v16 = vmax.f32 %v228_v12, 0.0 }
  0x15   : > { %v233_v17 = vmax.f32 %v229_v13, 0.0 }
  0x16   : > { %v345_v18 = vpack.c.bf16 %v231_v15, %v230_v14 }
  0x17   : > { %v350_v19 = vpack.c.bf16 %v233_v17, %v232_v16 }
  0x18   : > { %346 = vst [vmem:[%s208_s27] sm:$0xff] %v345_v18  }
  0x19   : > { %352 = vst [vmem:[%s208_s27 + $0x8] sm:$0xff] %v350_v19  }
  0x1a PF: > { %s13_s14 = sadd.s32 1, %s401_s14   ;;  %s466_s12 = smov %s397_s13 }
  0x1b   : > { %p10_p5 = scmp.ge.s32.totalorder %s13_s14, 6   ;;  %s467_s13 = smov %s469_s15 }
  0x1d   :  { %12 = sbr.rel (!%p10_p5) target bundleno = 2 (0x2), region = 62 }

// kernel: modifier_forward.21
= control target key start
LH: loop header
LB: loop body
LE: loop exit
PB: predicated region body
PF: predicated region fallthrough
CT: control target
= control target key end

     0   :  { %s644_s12 = smov 0   ;;  %s646_s13 = smov 0   ;;  %s715_s0 = inlined_call_operand.vmem [shape: bf16[4,128,64], index: 0, kind: input, shape index: {}]   ;;  %s716_s1 = inlined_call_operand.vmem [shape: bf16[4,64,128], index: 1, kind: input, shape index: {}]   ;;  %s717_s2 = inlined_call_operand.vmem [shape: f32[1,128], index: 2, kind: input, shape index: {}]   ;;  %s718_s3 = inlined_call_operand.vmem [shape: f32[4,128,128], index: 3, kind: output, shape index: {}]  }
   0x1   :  { %s648_s14 = smov 0   ;;  %s650_s15 = smov 0  }
   0x2   :  { %s652_s16 = smov 0  }
   0x3 LB: > { %s22_s17 = sadd.s32 1, %s614_s14  ;;  %s25_s18 = sadd.s32 1, %s618_s15  ;;  %s622_s16 = sphi %s652_s16, %s13_s16   ;;  %s618_s15 = sphi %s650_s15, %s722_s15   ;;  %s614_s14 = sphi %s648_s14, %s721_s14   ;;  %s610_s13 = sphi %s646_s13, %s720_s13   ;;  %s606_s12 = sphi %s644_s12, %s719_s12  }
   0x4   : > { %p23_p0 = scmp.ge.s32.totalorder %s22_s17, 2  ;;  %p459_p1 = scmp.ge.s32.totalorder %s622_s16, 1 }
   0x5   : > { %p168_p2 = scmp.lt.s32.totalorder %s622_s16, 9 }
   0x6   : > { %s724_s17 = smov (%p23_p0, %s22_s17), 0  ;;  %s726_s18 = smov (!%p23_p0, %s25_s18), %s618_s15 }
   0x7   : > { %p169_p3 = pnand %p459_p1, %p168_p2  ;;  %p27_p4 = scmp.ge.s32.totalorder %s726_s18, 4 }
   0x8   : > { %p206_p5 = scmp.lt.s32.totalorder (!%p169_p3), %s610_s13, 3  ;;  %s460_s19 = sshll.u32 (!%p169_p3), %s606_s12, 3 }
   0x9   : > { %s728_s18 = smov (%p27_p4, %s726_s18), 0  ;;  %172 = sbr.rel (%p169_p3) target bundleno = 185 (0xb9), region = 32 }
   0xa   : > { %p208_p6 = scmp.lt.s32.totalorder (!%p169_p3), %s460_s19, 15 }
   0xe   : > { %s730_s13 = smov (!%p206_p5, %s610_s13), 3  ;;  %s732_s19 = smov (!%p208_p6, %s460_s19), 15  ;;  %vm295_vm0 = vcmask 523264   ;;  %v567_v8 = vld [vmem:[%s717_s2] ss:$0 sm:$0xff] }
   0xf   : > { %s506_s20 = sshll.u32 %s730_s13, 5  ;;  %s461_s24 = sshll.u32 %s730_s13, 4 }
  0x10   : > { %s219_s23 = scalar_lea.vmem %s716_s1, %s506_s20  ;;  %s677_s25 = sadd.s32 %s461_s24, %s732_s19 }
  0x11   : > { %v514_v0 = vld [vmem:[%s219_s23 + $0x18] sm:$0xff]  ;;  %v513_v1 = vld [vmem:[%s219_s23 + $0x10] sm:$0xff]  ;;  %v512_v2 = vld [vmem:[%s219_s23 + $0x8] sm:$0xff]  ;;  %s462_s26 = sshll.u32 %s677_s25, 2  ;;  %s467_s5 = sshll.u32 %s677_s25, 3 }
  0x12   : > { %312 = vmatpush.bf16.msra.mxu0 %v514_v0  ;;  %515 = vmatpush.bf16.msra.mxu1 %v514_v0  ;;  %v511_v3 = vld [vmem:[%s219_s23] sm:$0xff]  ;;  %s213_s29 = scalar_lea.vmem %s715_s0, %s462_s26  ;;  %s690_s8 = scalar_lea.vmem %s718_s3, %s467_s5 }
  0x13   : > { %516 = vmatpush.bf16.msra.mxu2 %v514_v0  ;;  %517 = vmatpush.bf16.msra.mxu3 %v514_v0  ;;  %v507_v4 = vld [vmem:[%s213_s29] sm:$0xff]  ;;  %v508_v5 = vld [vmem:[%s213_s29 + $0x8] sm:$0xff]  ;;  %v509_v6 = vld [vmem:[%s213_s29 + $0x10] sm:$0xff] }
  0x14   : > { %v510_v7 = vld [vmem:[%s213_s29 + $0x18] sm:$0xff] }
  0x16   : > { %313 = vmatpush.bf16.msra.mxu0 %v513_v1  ;;  %518 = vmatpush.bf16.msra.mxu1 %v513_v1 }
  0x17   : > { %519 = vmatpush.bf16.msra.mxu2 %v513_v1  ;;  %520 = vmatpush.bf16.msra.mxu3 %v513_v1 }
  0x1a   : > { %314 = vmatpush.bf16.msra.mxu0 %v512_v2  ;;  %521 = vmatpush.bf16.msra.mxu1 %v512_v2 }
  0x1b   : > { %522 = vmatpush.bf16.msra.mxu2 %v512_v2  ;;  %523 = vmatpush.bf16.msra.mxu3 %v512_v2 }
  0x1e   : > { %315 = vmatpush.bf16.msra.mxu0 %v511_v3  ;;  %524 = vmatpush.bf16.msra.mxu1 %v511_v3 }
  0x1f   : > { %525 = vmatpush.bf16.msra.mxu2 %v511_v3  ;;  %526 = vmatpush.bf16.msra.mxu3 %v511_v3 }
  0x21   : > { %500 = vmatmul.msk.bf16.vlgmr.msra.gmra.mxu0 %vm295_vm0, %v507_v4  ;;  %501 = vmatmul.msk.bf16.vlgmr.msra.gmra.mxu1 %vm295_vm0, %v508_v5 }
  0x22   : > { %502 = vmatmul.msk.bf16.vlgmr.msra.gmra.mxu2 %vm295_vm0, %v509_v6  ;;  %503 = vmatmul.msk.bf16.vlgmr.msra.gmra.mxu3 %vm295_vm0, %v510_v7 }
  0x9e   : > { %v317_v9 = vpop.f32.mrf.mxu0  ;;  %v322_v10 = vpop.f32.mrf.mxu1 }
  0x9f   : > { %v318_v11 = vadd.f32 %v567_v8, %v317_v9  ;;  %v323_v12 = vadd.f32 %v567_v8, %v322_v10 }
  0xa1   : > { %568 = vtanh.f32 %v318_v11 }
  0xa2   : > { %570 = vtanh.f32 %v323_v12 }
  0xa5   : > { %v327_v13 = vpop.f32.mrf.mxu2  ;;  %v332_v14 = vpop.f32.mrf.mxu3 }
  0xa6   : > { %v328_v15 = vadd.f32 %v567_v8, %v327_v13  ;;  %v333_v16 = vadd.f32 %v567_v8, %v332_v14  ;;  %v319_v17 = vpop.f32.mrf.mxu0  ;;  %v324_v18 = vpop.f32.mrf.mxu1 }
  0xa7   : > { %v569_v19 = vpop.eup %568  ;;  %v320_v20 = vadd.f32 %v567_v8, %v319_v17  ;;  %v325_v21 = vadd.f32 %v567_v8, %v324_v18 }
  0xa8   : > { %v571_v22 = vpop.eup %570  ;;  %345 = vst [vmem:[%s690_s8] sm:$0xff] %v569_v19  ;;  %572 = vtanh.f32 %v328_v15 }
  0xa9   : > { %347 = vst [vmem:[%s690_s8 + $0x10] sm:$0xff] %v571_v22  ;;  %574 = vtanh.f32 %v333_v16 }
  0xaa   : > { %576 = vtanh.f32 %v320_v20 }
  0xab   : > { %578 = vtanh.f32 %v325_v21 }
  0xad   : > { %v329_v23 = vpop.f32.mrf.mxu2  ;;  %v334_v24 = vpop.f32.mrf.mxu3 }
  0xae   : > { %v573_v25 = vpop.eup %572  ;;  %v330_v26 = vadd.f32 %v567_v8, %v329_v23  ;;  %v335_v27 = vadd.f32 %v567_v8, %v334_v24 }
  0xaf   : > { %v575_v28 = vpop.eup %574  ;;  %349 = vst [vmem:[%s690_s8 + $0x20] sm:$0xff] %v573_v25 }
  0xb0   : > { %v577_v29 = vpop.eup %576  ;;  %351 = vst [vmem:[%s690_s8 + $0x30] sm:$0xff] %v575_v28  ;;  %580 = vtanh.f32 %v330_v26 }
  0xb1   : > { %v579_v30 = vpop.eup %578  ;;  %346 = vst [vmem:[%s690_s8 + $0x8] sm:$0xff] %v577_v29  ;;  %582 = vtanh.f32 %v335_v27 }
  0xb2   : > { %348 = vst [vmem:[%s690_s8 + $0x18] sm:$0xff] %v579_v30 }
  0xb6   : > { %v581_v31 = vpop.eup %580 }
  0xb7   : > { %v583_v32 = vpop.eup %582  ;;  %350 = vst [vmem:[%s690_s8 + $0x28] sm:$0xff] %v581_v31 }
  0xb8   : > { %352 = vst [vmem:[%s690_s8 + $0x38] sm:$0xff] %v583_v32 }
  0xb9 PF: > { %s13_s16 = sadd.s32 1, %s622_s16   ;;  %s719_s12 = smov %s614_s14 }
  0xba   : > { %p10_p7 = scmp.ge.s32.totalorder %s13_s16, 10   ;;  %s720_s13 = smov %s618_s15 }
  0xbb   : > { %s721_s14 = smov %s724_s17  ;;  %s722_s15 = smov %s728_s18 }
  0xbc   :  { %12 = sbr.rel (!%p10_p7) target bundleno = 3 (0x3), region = 65 }

</bundles_post_ra>
